<compile_context>
chip_gen: v6e
topology: v6e:2x2x1
jax: 0.10.0
libtpu: 0.0.40
codegen_flags: <defaults>
</compile_context>

<pallas_src>
import math

import jax
import jax.numpy as jnp
from jax.experimental import pallas as pl
from jax.experimental.pallas import tpu as pltpu


def _transpose_kernel(x_ref, o_ref):
    # x_ref: (TG, TM, TN) VMEM tile  ->  o_ref: (TG, TN, TM).
    # The last-two-axis swap lowers to whole-vreg XLU vxpose ops (vector
    # extended slot), leaving the kernel purely HBM/DMA-bound.
    o_ref[...] = jnp.swapaxes(x_ref[...], -1, -2)


def _round_up(v, m):
    return -(-v // m) * m


def _vmem_capacity_bytes():
    try:
        return int(pltpu.get_tpu_info().vmem_capacity_bytes)
    except Exception:
        return 64 << 20  # be conservative: assume v7x (64 MiB per TensorCore)


def _select_tiles(G, M, N, itemsize, block_bytes_target):
    """Pick (TG, TM, TN).  TM/TN are multiples of 128 (lane-dense on both the
    read and the write side, since each appears as the lane dim of one of the
    two blocks); they are grown toward block_bytes_target before any
    leading-row batching."""
    tm_cap = min(1024, _round_up(M, 128))
    tn_cap = min(1024, _round_up(N, 128))
    # dtype-aware starting lane tile: keep contiguous HBM runs >= ~1 KiB
    # (256 lanes f32, 512 bf16, 1024 int8/fp8).
    start = int(min(1024, max(256, (256 * 4) // max(1, itemsize))))
    TM = min(start, tm_cap)
    TN = min(start, tn_cap)
    # Grow TN first (longer bursts on the read side), then TM.
    while TM * TN * itemsize < block_bytes_target and TN + 128 <= tn_cap:
        TN += 128
    while TM * TN * itemsize < block_bytes_target and TM + 128 <= tm_cap:
        TM += 128
    # Only batch leading rows with whatever byte budget is left.
    TG = max(1, min(G, block_bytes_target // max(1, TM * TN * itemsize)))
    return TG, TM, TN


def transpose_last_two(x):
    """Equivalent of torch.Tensor.transpose(-1, -2) for arrays of rank >= 2."""
    if x.ndim < 2:
        raise ValueError("transpose(-1, -2) requires rank >= 2")
    *lead, M, N = x.shape

    # Trailing dims below 128 would force masked (lane-sparse) vector stores,
    # a 2-8x penalty; plain XLA swapaxes is already near roofline there.
    if min(M, N) < 128:
        return jnp.swapaxes(x, -1, -2)

    G = math.prod(lead) if lead else 1
    xg = x.reshape(G, M, N)
    itemsize = jnp.dtype(x.dtype).itemsize

    # Generation-aware block / scoped-VMEM budget.
    vmem_cap = _vmem_capacity_bytes()
    if vmem_cap >= (100 << 20):            # v5e / v6e: 128 MiB physical VMEM
        block_bytes_target = 8 << 20
        vmem_limit_cap = 96 << 20
    else:                                  # v7x: 64 MiB physical VMEM
        block_bytes_target = 4 << 20
        vmem_limit_cap = 48 << 20

    TG, TM, TN = _select_tiles(G, M, N, itemsize, block_bytes_target)
    grid = (pl.cdiv(G, TG), pl.cdiv(M, TM), pl.cdiv(N, TN))

    block_bytes = TG * TM * TN * itemsize
    # 2 double-buffered input + 2 double-buffered output blocks, with headroom;
    # clamped to the per-generation scoped-VMEM cap.
    vmem_limit = int(min(max(6 * block_bytes, 32 << 20), vmem_limit_cap))

    out = pl.pallas_call(
        _transpose_kernel,
        out_shape=jax.ShapeDtypeStruct((G, N, M), x.dtype),
        grid_spec=pltpu.PrefetchScalarGridSpec(
            num_scalar_prefetch=0,
            grid=grid,
            in_specs=[
                pl.BlockSpec((TG, TM, TN), lambda g, i, j: (g, i, j)),
            ],
            # Swap the (i, j) block indices: the tiling is transposed here and
            # the kernel transposes within each tile.
            out_specs=pl.BlockSpec((TG, TN, TM), lambda g, i, j: (g, j, i)),
        ),
        compiler_params=pltpu.CompilerParams(
            # Every (g, i, j) block is independent -> all axes parallel so the
            # second TensorCore on v7x is used even for 2-D (G == 1) inputs.
            dimension_semantics=("parallel", "parallel", "parallel"),
            vmem_limit_bytes=vmem_limit,
        ),
        cost_estimate=pl.CostEstimate(
            flops=0,
            transcendentals=0,
            bytes_accessed=2 * G * M * N * itemsize,
        ),
    )(xg)
    return out.reshape(*lead, N, M)


class Transpose:
    """Mirror of the PyTorch module: y = x.transpose(dim1, dim2)."""

    def __init__(self, dim1=-1, dim2=-2):
        self.dim1 = dim1
        self.dim2 = dim2

    def __call__(self, x):
        nd = x.ndim
        d1, d2 = self.dim1 % nd, self.dim2 % nd
        if d1 == d2:
            return x
        if {d1, d2} == {nd - 1, nd - 2}:
            return transpose_last_two(x)
        # TODO(synk): non-trailing dim pairs are pure data-movement permutes
        # with nothing to fuse on-chip; leave those to XLA.
        return jnp.swapaxes(x, d1, d2)


if __name__ == "__main__":
    key = jax.random.PRNGKey(0)
    mod = Transpose()  # defaults dim1=-1, dim2=-2, as in video2class.py

    # Main example: (batch, channels, seq, hidden) feature tensor with
    # lane-dense trailing dims so the Pallas kernel path is exercised.
    x = jax.random.normal(key, (2, 4, 128, 256), dtype=jnp.float32)
    out = jax.block_until_ready(mod(x))
    ref = jnp.swapaxes(x, -1, -2)
    assert out.shape == ref.shape, (out.shape, ref.shape)
    assert jnp.array_equal(out, ref)

    # Non-divisible trailing dims (edge blocks on both tiled axes).
    k2 = jax.random.PRNGKey(1)
    x2 = jax.random.normal(k2, (2, 2, 160, 384), dtype=jnp.float32)
    out2 = jax.block_until_ready(mod(x2))
    assert jnp.array_equal(out2, jnp.swapaxes(x2, -1, -2))

    # bf16 path (dtype-aware tile target) on a plain 2-D matrix (G == 1).
    k3 = jax.random.PRNGKey(2)
    x3 = jax.random.normal(k3, (512, 640), dtype=jnp.float32).astype(jnp.bfloat16)
    out3 = jax.block_until_ready(mod(x3))
    assert jnp.array_equal(out3, jnp.swapaxes(x3, -1, -2))

    # Skinny trailing dims take the XLA fallback (masked-store cliff avoided).
    k4 = jax.random.PRNGKey(3)
    x4 = jax.random.normal(k4, (2, 4, 16, 32), dtype=jnp.float32)
    out4 = jax.block_until_ready(mod(x4))
    assert jnp.array_equal(out4, jnp.swapaxes(x4, -1, -2))

    print("KERNEL_OK")
</pallas_src>

<mosaic_0001>
module attributes {stable_mosaic.version = 11 : i64} {
  func.func @_transpose_kernel(%arg0: i32, %arg1: i32, %arg2: i32, %arg3: memref<8x128x256xf32, #tpu.memory_space<vmem>>, %arg4: memref<8x256x128xf32, #tpu.memory_space<vmem>>) attributes {dimension_semantics = [#tpu.dimension_semantics<parallel>, #tpu.dimension_semantics<parallel>, #tpu.dimension_semantics<parallel>], iteration_bounds = array<i64: 1, 1, 1>, scalar_prefetch = 0 : i64, scratch_operands = 0 : i64, tpu.core_type = #tpu.core_type<tc>, window_params = [{transform_indices = @transform_0, window_bounds = array<i64: 8, 128, 256>}, {transform_indices = @transform_1, window_bounds = array<i64: 8, 256, 128>}]} {
    %c0 = arith.constant 0 : index
    %c0_0 = arith.constant 0 : index
    %c0_1 = arith.constant 0 : index
    %0 = vector.load %arg3[%c0, %c0_0, %c0_1] : memref<8x128x256xf32, #tpu.memory_space<vmem>>, vector<8x128x256xf32>
    %1 = tpu.transpose %0, [0, 2, 1] : vector<8x128x256xf32> -> vector<8x256x128xf32>
    %c0_2 = arith.constant 0 : index
    %c0_3 = arith.constant 0 : index
    %c0_4 = arith.constant 0 : index
    %2 = vector.load %arg4[%c0_2, %c0_3, %c0_4] : memref<8x256x128xf32, #tpu.memory_space<vmem>>, vector<8x256x128xf32>
    tpu.vector_store %arg4[%c0_2, %c0_3, %c0_4], %1 {strides = array<i32>} : memref<8x256x128xf32, #tpu.memory_space<vmem>>, vector<8x256x128xf32>,
    return
  }
  func.func @transform_0(%arg0: i32, %arg1: i32, %arg2: i32) -> (i32, i32, i32) {
    %c0_i32 = arith.constant 0 : i32
    return %arg0, %arg1, %arg2 : i32, i32, i32
  }
  func.func @transform_1(%arg0: i32, %arg1: i32, %arg2: i32) -> (i32, i32, i32) {
    %c0_i32 = arith.constant 0 : i32
    return %arg0, %arg2, %arg1 : i32, i32, i32
  }
}

</mosaic_0001>

<bundles_post_ra>
// kernel: tpu_custom_call.1
= control target key start
LH: loop header
LB: loop body
LE: loop exit
PB: predicated region body
PF: predicated region fallthrough
CT: control target
= control target key end

     0   :  { %6 = vsyncpa [#allocation3], 0  ;;  %s1136_s0 = inlined_call_operand.hbm [shape: f32[8,128,256], index: 0, kind: input, shape index: {}]   ;;  %s1137_s1 = inlined_call_operand.hbm [shape: f32[8,256,128], index: 1, kind: output, shape index: {}]  }
   0x1   :  { %7 = vsyncpa [#allocation4], 0  ;;  %s1114_s6 = smov [#allocation2]  }
   0x2   :  { %s13_s7 = sshll.u32 %s1114_s6, 4  ;;  %s14_s7 = int_to_ptr.vmem [resolvable:$true] %s13_s7 }
   0x3   :  { %s1078_s8 = scalar_lea.vmem %s14_s7, 32768  ;;  %p1083_p1 = scmp.lt.s32.totalorder %s14_s7, %s14_s7 }
   0x4   :  { %p1079_p0 = scmp.ne.s32.totalorder %s14_s7, %s1078_s8  ;;  %p1084_p2 = scmp.lt.s32.totalorder %s1078_s8, %s1078_s8 }
   0x6   :  { %p1085_p3 = por %p1084_p2, %p1083_p1 }
   0x8   :  { %p1086_p4 = pnand %p1085_p3, %p1079_p0 }
   0xa   :  { %1089 = shalt.err (!%p1086_p4)
}
   0xb   :  { %s1115_s9 = smov 256   ;;  %s1116_s10 = smov 16  }
   0xc   :  { %19 = dma.hbm_to_vmem [thread:$0]  %s1136_s0, 32768, %s14_s7, [#allocation3], %s1115_s9, %s1115_s9, %s1116_s10  }
   0xd   :  { %1110 = dma.done.wait [#allocation3], 32768  }
   0xe   :  { %1111 = vsyncadd [#allocation3], 4294934528  ;;  %v24_v0 = vld [vmem:[#allocation2 + $0x8] sm:$0xff]  ;;  %v23_v1 = vld [vmem:[#allocation2] sm:$0xff]  ;;  %s1117_s0 = smov [#allocation5]  }
   0xf   :  { %311 = vxpose.xlu1.b32.start [1/16] %v24_v0, 128  ;;  %279 = vxpose.xlu0.b32.start [1/16] %v23_v1, 128  ;;  %v26_v2 = vld [vmem:[#allocation2 + $0x18] sm:$0xff]  ;;  %v25_v3 = vld [vmem:[#allocation2 + $0x10] sm:$0xff]  ;;  %v28_v4 = vld [vmem:[#allocation2 + $0x28] sm:$0xff]  ;;  %s1052_s13 = sshll.u32 %s1117_s0, 4  ;;  %s1053_s13 = int_to_ptr.vmem [resolvable:$true] %s1052_s13 }
  0x10   :  { %v27_v5 = vld [vmem:[#allocation2 + $0x20] sm:$0xff]  ;;  %v30_v6 = vld [vmem:[#allocation2 + $0x38] sm:$0xff]  ;;  %v29_v7 = vld [vmem:[#allocation2 + $0x30] sm:$0xff]  ;;  %s1090_s14 = scalar_lea.vmem %s1053_s13, 32768  ;;  %p1095_p6 = scmp.lt.s32.totalorder %s1053_s13, %s1053_s13 }
  0x11   :  { %v32_v8 = vld [vmem:[#allocation2 + $0x48] sm:$0xff]  ;;  %v31_v9 = vld [vmem:[#allocation2 + $0x40] sm:$0xff]  ;;  %v34_v10 = vld [vmem:[#allocation2 + $0x58] sm:$0xff]  ;;  %p1091_p5 = scmp.ne.s32.totalorder %s1053_s13, %s1090_s14  ;;  %p1096_p7 = scmp.lt.s32.totalorder %s1090_s14, %s1090_s14 }
  0x12   :  { %v33_v11 = vld [vmem:[#allocation2 + $0x50] sm:$0xff]  ;;  %v36_v12 = vld [vmem:[#allocation2 + $0x68] sm:$0xff]  ;;  %v35_v13 = vld [vmem:[#allocation2 + $0x60] sm:$0xff] }
  0x13   :  { %312 = vxpose.xlu1.b32.cont [2/16] %v26_v2, 128  ;;  %280 = vxpose.xlu0.b32.cont [2/16] %v25_v3, 128  ;;  %v38_v14 = vld [vmem:[#allocation2 + $0x78] sm:$0xff]  ;;  %v37_v15 = vld [vmem:[#allocation2 + $0x70] sm:$0xff]  ;;  %v40_v16 = vld [vmem:[#allocation2 + $0x88] sm:$0xff]  ;;  %p1097_p8 = por %p1096_p7, %p1095_p6 }
  0x14   :  { %v39_v17 = vld [vmem:[#allocation2 + $0x80] sm:$0xff]  ;;  %v42_v18 = vld [vmem:[#allocation2 + $0x98] sm:$0xff]  ;;  %v41_v19 = vld [vmem:[#allocation2 + $0x90] sm:$0xff] }
  0x15   :  { %v44_v20 = vld [vmem:[#allocation2 + $0xa8] sm:$0xff]  ;;  %v43_v21 = vld [vmem:[#allocation2 + $0xa0] sm:$0xff]  ;;  %v46_v22 = vld [vmem:[#allocation2 + $0xb8] sm:$0xff]  ;;  %p1098_p9 = pnand %p1097_p8, %p1091_p5 }
  0x16   :  { %v45_v23 = vld [vmem:[#allocation2 + $0xb0] sm:$0xff]  ;;  %v48_v24 = vld [vmem:[#allocation2 + $0xc8] sm:$0xff]  ;;  %v47_v25 = vld [vmem:[#allocation2 + $0xc0] sm:$0xff] }
  0x17   :  { %313 = vxpose.xlu1.b32.cont [3/16] %v28_v4, 128  ;;  %281 = vxpose.xlu0.b32.cont [3/16] %v27_v5, 128  ;;  %v50_v26 = vld [vmem:[#allocation2 + $0xd8] sm:$0xff]  ;;  %v49_v27 = vld [vmem:[#allocation2 + $0xd0] sm:$0xff]  ;;  %v52_v28 = vld [vmem:[#allocation2 + $0xe8] sm:$0xff] }
  0x18   :  { %v51_v29 = vld [vmem:[#allocation2 + $0xe0] sm:$0xff]  ;;  %v54_v30 = vld [vmem:[#allocation2 + $0xf8] sm:$0xff]  ;;  %v53_v31 = vld [vmem:[#allocation2 + $0xf0] sm:$0xff] }
  0x19   :  { %v56_v32 = vld [vmem:[#allocation2 + $0x108] sm:$0xff]  ;;  %v55_v33 = vld [vmem:[#allocation2 + $0x100] sm:$0xff]  ;;  %v58_v34 = vld [vmem:[#allocation2 + $0x118] sm:$0xff] }
  0x1a   :  { %v57_v35 = vld [vmem:[#allocation2 + $0x110] sm:$0xff]  ;;  %v60_v36 = vld [vmem:[#allocation2 + $0x128] sm:$0xff]  ;;  %v59_v37 = vld [vmem:[#allocation2 + $0x120] sm:$0xff] }
  0x1b   :  { %314 = vxpose.xlu1.b32.cont [4/16] %v30_v6, 128  ;;  %282 = vxpose.xlu0.b32.cont [4/16] %v29_v7, 128  ;;  %v62_v38 = vld [vmem:[#allocation2 + $0x138] sm:$0xff]  ;;  %v61_v39 = vld [vmem:[#allocation2 + $0x130] sm:$0xff]  ;;  %v64_v40 = vld [vmem:[#allocation2 + $0x148] sm:$0xff] }
  0x1c   :  { %v63_v41 = vld [vmem:[#allocation2 + $0x140] sm:$0xff]  ;;  %v66_v42 = vld [vmem:[#allocation2 + $0x158] sm:$0xff]  ;;  %v65_v43 = vld [vmem:[#allocation2 + $0x150] sm:$0xff] }
  0x1d   :  { %v68_v44 = vld [vmem:[#allocation2 + $0x168] sm:$0xff]  ;;  %v67_v45 = vld [vmem:[#allocation2 + $0x160] sm:$0xff]  ;;  %v70_v46 = vld [vmem:[#allocation2 + $0x178] sm:$0xff] }
  0x1e   :  { %v69_v47 = vld [vmem:[#allocation2 + $0x170] sm:$0xff]  ;;  %v72_v48 = vld [vmem:[#allocation2 + $0x188] sm:$0xff]  ;;  %v71_v49 = vld [vmem:[#allocation2 + $0x180] sm:$0xff] }
  0x1f   :  { %315 = vxpose.xlu1.b32.cont [5/16] %v32_v8, 128  ;;  %283 = vxpose.xlu0.b32.cont [5/16] %v31_v9, 128  ;;  %v74_v50 = vld [vmem:[#allocation2 + $0x198] sm:$0xff]  ;;  %v73_v51 = vld [vmem:[#allocation2 + $0x190] sm:$0xff]  ;;  %v76_v52 = vld [vmem:[#allocation2 + $0x1a8] sm:$0xff] }
  0x20   :  { %v75_v53 = vld [vmem:[#allocation2 + $0x1a0] sm:$0xff]  ;;  %v78_v54 = vld [vmem:[#allocation2 + $0x1b8] sm:$0xff]  ;;  %v77_v55 = vld [vmem:[#allocation2 + $0x1b0] sm:$0xff] }
  0x21   :  { %v80_v56 = vld [vmem:[#allocation2 + $0x1c8] sm:$0xff]  ;;  %v79_v57 = vld [vmem:[#allocation2 + $0x1c0] sm:$0xff]  ;;  %v82_v58 = vld [vmem:[#allocation2 + $0x1d8] sm:$0xff] }
  0x22   :  { %v81_v59 = vld [vmem:[#allocation2 + $0x1d0] sm:$0xff]  ;;  %v84_v60 = vld [vmem:[#allocation2 + $0x1e8] sm:$0xff]  ;;  %v83_v61 = vld [vmem:[#allocation2 + $0x1e0] sm:$0xff] }
  0x23   :  { %316 = vxpose.xlu1.b32.cont [6/16] %v34_v10, 128  ;;  %284 = vxpose.xlu0.b32.cont [6/16] %v33_v11, 128  ;;  %v86_v62 = vld [vmem:[#allocation2 + $0x1f8] sm:$0xff]  ;;  %v85_v63 = vld [vmem:[#allocation2 + $0x1f0] sm:$0xff]  ;;  %v88_v2 = vld [vmem:[#allocation2 + $0x208] sm:$0xff] }
  0x24   :  { %v87_v3 = vld [vmem:[#allocation2 + $0x200] sm:$0xff]  ;;  %v90_v6 = vld [vmem:[#allocation2 + $0x218] sm:$0xff]  ;;  %v89_v7 = vld [vmem:[#allocation2 + $0x210] sm:$0xff] }
  0x25   :  { %v92_v10 = vld [vmem:[#allocation2 + $0x228] sm:$0xff]  ;;  %v91_v11 = vld [vmem:[#allocation2 + $0x220] sm:$0xff] }
  0x27   :  { %317 = vxpose.xlu1.b32.cont [7/16] %v36_v12, 128  ;;  %285 = vxpose.xlu0.b32.cont [7/16] %v35_v13, 128 }
  0x2b   :  { %318 = vxpose.xlu1.b32.cont [8/16] %v38_v14, 128  ;;  %286 = vxpose.xlu0.b32.cont [8/16] %v37_v15, 128  ;;  %v94_v14 = vld [vmem:[#allocation2 + $0x238] sm:$0xff]  ;;  %v93_v15 = vld [vmem:[#allocation2 + $0x230] sm:$0xff] }
  0x2f   :  { %319 = vxpose.xlu1.b32.cont [9/16] %v40_v16, 128  ;;  %287 = vxpose.xlu0.b32.cont [9/16] %v39_v17, 128 }
  0x33   :  { %320 = vxpose.xlu1.b32.cont [10/16] %v42_v18, 128  ;;  %288 = vxpose.xlu0.b32.cont [10/16] %v41_v19, 128  ;;  %v96_v18 = vld [vmem:[#allocation2 + $0x248] sm:$0xff]  ;;  %v95_v19 = vld [vmem:[#allocation2 + $0x240] sm:$0xff] }
  0x37   :  { %321 = vxpose.xlu1.b32.cont [11/16] %v44_v20, 128  ;;  %289 = vxpose.xlu0.b32.cont [11/16] %v43_v21, 128 }
  0x3b   :  { %322 = vxpose.xlu1.b32.cont [12/16] %v46_v22, 128  ;;  %290 = vxpose.xlu0.b32.cont [12/16] %v45_v23, 128  ;;  %v98_v22 = vld [vmem:[#allocation2 + $0x258] sm:$0xff]  ;;  %v97_v23 = vld [vmem:[#allocation2 + $0x250] sm:$0xff] }
  0x3f   :  { %323 = vxpose.xlu1.b32.cont [13/16] %v48_v24, 128  ;;  %291 = vxpose.xlu0.b32.cont [13/16] %v47_v25, 128 }
  0x43   :  { %324 = vxpose.xlu1.b32.cont [14/16] %v50_v26, 128  ;;  %292 = vxpose.xlu0.b32.cont [14/16] %v49_v27, 128  ;;  %v100_v26 = vld [vmem:[#allocation2 + $0x268] sm:$0xff]  ;;  %v99_v27 = vld [vmem:[#allocation2 + $0x260] sm:$0xff] }
  0x47   :  { %325 = vxpose.xlu1.b32.cont [15/16] %v52_v28, 128  ;;  %293 = vxpose.xlu0.b32.cont [15/16] %v51_v29, 128 }
  0x4b   :  { %326 = vxpose.xlu1.b32.end [16/16] %v54_v30, 128  ;;  %294 = vxpose.xlu0.b32.end [16/16] %v53_v31, 128  ;;  %v102_v30 = vld [vmem:[#allocation2 + $0x278] sm:$0xff]  ;;  %v101_v31 = vld [vmem:[#allocation2 + $0x270] sm:$0xff] }
  0x4f   :  { %375 = vxpose.xlu1.b32.start [1/16] %v56_v32, 128  ;;  %343 = vxpose.xlu0.b32.start [1/16] %v55_v33, 128 }
  0x53   :  { %376 = vxpose.xlu1.b32.cont [2/16] %v58_v34, 128  ;;  %344 = vxpose.xlu0.b32.cont [2/16] %v57_v35, 128  ;;  %v104_v34 = vld [vmem:[#allocation2 + $0x288] sm:$0xff]  ;;  %v103_v35 = vld [vmem:[#allocation2 + $0x280] sm:$0xff] }
  0x57   :  { %377 = vxpose.xlu1.b32.cont [3/16] %v60_v36, 128  ;;  %345 = vxpose.xlu0.b32.cont [3/16] %v59_v37, 128 }
  0x5b   :  { %378 = vxpose.xlu1.b32.cont [4/16] %v62_v38, 128  ;;  %346 = vxpose.xlu0.b32.cont [4/16] %v61_v39, 128  ;;  %v106_v38 = vld [vmem:[#allocation2 + $0x298] sm:$0xff]  ;;  %v105_v39 = vld [vmem:[#allocation2 + $0x290] sm:$0xff] }
  0x5f   :  { %379 = vxpose.xlu1.b32.cont [5/16] %v64_v40, 128  ;;  %347 = vxpose.xlu0.b32.cont [5/16] %v63_v41, 128 }
  0x63   :  { %380 = vxpose.xlu1.b32.cont [6/16] %v66_v42, 128  ;;  %348 = vxpose.xlu0.b32.cont [6/16] %v65_v43, 128  ;;  %v108_v42 = vld [vmem:[#allocation2 + $0x2a8] sm:$0xff]  ;;  %v107_v43 = vld [vmem:[#allocation2 + $0x2a0] sm:$0xff] }
  0x67   :  { %381 = vxpose.xlu1.b32.cont [7/16] %v68_v44, 128  ;;  %349 = vxpose.xlu0.b32.cont [7/16] %v67_v45, 128 }
  0x6b   :  { %382 = vxpose.xlu1.b32.cont [8/16] %v70_v46, 128  ;;  %350 = vxpose.xlu0.b32.cont [8/16] %v69_v47, 128  ;;  %v110_v46 = vld [vmem:[#allocation2 + $0x2b8] sm:$0xff]  ;;  %v109_v47 = vld [vmem:[#allocation2 + $0x2b0] sm:$0xff] }
  0x6f   :  { %383 = vxpose.xlu1.b32.cont [9/16] %v72_v48, 128  ;;  %351 = vxpose.xlu0.b32.cont [9/16] %v71_v49, 128 }
  0x73   :  { %384 = vxpose.xlu1.b32.cont [10/16] %v74_v50, 128  ;;  %352 = vxpose.xlu0.b32.cont [10/16] %v73_v51, 128  ;;  %v112_v50 = vld [vmem:[#allocation2 + $0x2c8] sm:$0xff]  ;;  %v111_v51 = vld [vmem:[#allocation2 + $0x2c0] sm:$0xff] }
  0x77   :  { %385 = vxpose.xlu1.b32.cont [11/16] %v76_v52, 128  ;;  %353 = vxpose.xlu0.b32.cont [11/16] %v75_v53, 128 }
  0x7b   :  { %386 = vxpose.xlu1.b32.cont [12/16] %v78_v54, 128  ;;  %354 = vxpose.xlu0.b32.cont [12/16] %v77_v55, 128  ;;  %v114_v54 = vld [vmem:[#allocation2 + $0x2d8] sm:$0xff]  ;;  %v113_v55 = vld [vmem:[#allocation2 + $0x2d0] sm:$0xff] }
  0x7f   :  { %387 = vxpose.xlu1.b32.cont [13/16] %v80_v56, 128  ;;  %355 = vxpose.xlu0.b32.cont [13/16] %v79_v57, 128 }
  0x83   :  { %388 = vxpose.xlu1.b32.cont [14/16] %v82_v58, 128  ;;  %356 = vxpose.xlu0.b32.cont [14/16] %v81_v59, 128  ;;  %v116_v58 = vld [vmem:[#allocation2 + $0x2e8] sm:$0xff]  ;;  %v115_v59 = vld [vmem:[#allocation2 + $0x2e0] sm:$0xff] }
  0x87   :  { %389 = vxpose.xlu1.b32.cont [15/16] %v84_v60, 128  ;;  %357 = vxpose.xlu0.b32.cont [15/16] %v83_v61, 128 }
  0x8b   :  { %390 = vxpose.xlu1.b32.end [16/16] %v86_v62, 128  ;;  %v327_v0 = vpop.trf.xlu1  ;;  %358 = vxpose.xlu0.b32.end [16/16] %v85_v63, 128  ;;  %v295_v1 = vpop.trf.xlu0  ;;  %v118_v62 = vld [vmem:[#allocation2 + $0x2f8] sm:$0xff]  ;;  %v117_v63 = vld [vmem:[#allocation2 + $0x2f0] sm:$0xff] }
  0x8c   :  { %807 = vst [vmem:[#allocation5 + $0x80] sm:$0xff] %v327_v0  ;;  %791 = vst [vmem:[#allocation5] sm:$0xff] %v295_v1 }
  0x8f   :  { %439 = vxpose.xlu1.b32.start [1/16] %v88_v2, 128  ;;  %v328_v4 = vpop.trf.xlu1  ;;  %407 = vxpose.xlu0.b32.start [1/16] %v87_v3, 128  ;;  %v296_v5 = vpop.trf.xlu0  ;;  %v120_v2 = vld [vmem:[#allocation2 + $0x308] sm:$0xff]  ;;  %v119_v3 = vld [vmem:[#allocation2 + $0x300] sm:$0xff] }
  0x90   :  { %808 = vst [vmem:[#allocation5 + $0x88] sm:$0xff] %v328_v4  ;;  %792 = vst [vmem:[#allocation5 + $0x8] sm:$0xff] %v296_v5 }
  0x93   :  { %440 = vxpose.xlu1.b32.cont [2/16] %v90_v6, 128  ;;  %v329_v8 = vpop.trf.xlu1  ;;  %408 = vxpose.xlu0.b32.cont [2/16] %v89_v7, 128  ;;  %v297_v9 = vpop.trf.xlu0  ;;  %v122_v6 = vld [vmem:[#allocation2 + $0x318] sm:$0xff]  ;;  %v121_v7 = vld [vmem:[#allocation2 + $0x310] sm:$0xff] }
  0x94   :  { %809 = vst [vmem:[#allocation5 + $0x90] sm:$0xff] %v329_v8  ;;  %793 = vst [vmem:[#allocation5 + $0x10] sm:$0xff] %v297_v9 }
  0x97   :  { %441 = vxpose.xlu1.b32.cont [3/16] %v92_v10, 128  ;;  %v330_v12 = vpop.trf.xlu1  ;;  %409 = vxpose.xlu0.b32.cont [3/16] %v91_v11, 128  ;;  %v298_v13 = vpop.trf.xlu0  ;;  %v124_v10 = vld [vmem:[#allocation2 + $0x328] sm:$0xff]  ;;  %v123_v11 = vld [vmem:[#allocation2 + $0x320] sm:$0xff] }
  0x98   :  { %810 = vst [vmem:[#allocation5 + $0x98] sm:$0xff] %v330_v12  ;;  %794 = vst [vmem:[#allocation5 + $0x18] sm:$0xff] %v298_v13 }
  0x9b   :  { %442 = vxpose.xlu1.b32.cont [4/16] %v94_v14, 128  ;;  %v331_v16 = vpop.trf.xlu1  ;;  %410 = vxpose.xlu0.b32.cont [4/16] %v93_v15, 128  ;;  %v299_v17 = vpop.trf.xlu0  ;;  %v126_v14 = vld [vmem:[#allocation2 + $0x338] sm:$0xff]  ;;  %v125_v15 = vld [vmem:[#allocation2 + $0x330] sm:$0xff] }
  0x9c   :  { %811 = vst [vmem:[#allocation5 + $0xa0] sm:$0xff] %v331_v16  ;;  %795 = vst [vmem:[#allocation5 + $0x20] sm:$0xff] %v299_v17 }
  0x9f   :  { %443 = vxpose.xlu1.b32.cont [5/16] %v96_v18, 128  ;;  %v332_v20 = vpop.trf.xlu1  ;;  %411 = vxpose.xlu0.b32.cont [5/16] %v95_v19, 128  ;;  %v300_v21 = vpop.trf.xlu0  ;;  %v128_v18 = vld [vmem:[#allocation2 + $0x348] sm:$0xff]  ;;  %v127_v19 = vld [vmem:[#allocation2 + $0x340] sm:$0xff] }
  0xa0   :  { %812 = vst [vmem:[#allocation5 + $0xa8] sm:$0xff] %v332_v20  ;;  %796 = vst [vmem:[#allocation5 + $0x28] sm:$0xff] %v300_v21 }
  0xa3   :  { %444 = vxpose.xlu1.b32.cont [6/16] %v98_v22, 128  ;;  %v333_v24 = vpop.trf.xlu1  ;;  %412 = vxpose.xlu0.b32.cont [6/16] %v97_v23, 128  ;;  %v301_v25 = vpop.trf.xlu0  ;;  %v130_v22 = vld [vmem:[#allocation2 + $0x358] sm:$0xff]  ;;  %v129_v23 = vld [vmem:[#allocation2 + $0x350] sm:$0xff] }
  0xa4   :  { %813 = vst [vmem:[#allocation5 + $0xb0] sm:$0xff] %v333_v24  ;;  %797 = vst [vmem:[#allocation5 + $0x30] sm:$0xff] %v301_v25 }
  0xa7   :  { %445 = vxpose.xlu1.b32.cont [7/16] %v100_v26, 128  ;;  %v334_v28 = vpop.trf.xlu1  ;;  %413 = vxpose.xlu0.b32.cont [7/16] %v99_v27, 128  ;;  %v302_v29 = vpop.trf.xlu0  ;;  %v132_v26 = vld [vmem:[#allocation2 + $0x368] sm:$0xff]  ;;  %v131_v27 = vld [vmem:[#allocation2 + $0x360] sm:$0xff] }
  0xa8   :  { %814 = vst [vmem:[#allocation5 + $0xb8] sm:$0xff] %v334_v28  ;;  %798 = vst [vmem:[#allocation5 + $0x38] sm:$0xff] %v302_v29 }
  0xab   :  { %446 = vxpose.xlu1.b32.cont [8/16] %v102_v30, 128  ;;  %v335_v32 = vpop.trf.xlu1  ;;  %414 = vxpose.xlu0.b32.cont [8/16] %v101_v31, 128  ;;  %v303_v33 = vpop.trf.xlu0  ;;  %v134_v30 = vld [vmem:[#allocation2 + $0x378] sm:$0xff]  ;;  %v133_v31 = vld [vmem:[#allocation2 + $0x370] sm:$0xff] }
  0xac   :  { %815 = vst [vmem:[#allocation5 + $0xc0] sm:$0xff] %v335_v32  ;;  %799 = vst [vmem:[#allocation5 + $0x40] sm:$0xff] %v303_v33 }
  0xaf   :  { %447 = vxpose.xlu1.b32.cont [9/16] %v104_v34, 128  ;;  %v336_v36 = vpop.trf.xlu1  ;;  %415 = vxpose.xlu0.b32.cont [9/16] %v103_v35, 128  ;;  %v304_v37 = vpop.trf.xlu0  ;;  %v136_v34 = vld [vmem:[#allocation2 + $0x388] sm:$0xff]  ;;  %v135_v35 = vld [vmem:[#allocation2 + $0x380] sm:$0xff] }
  0xb0   :  { %816 = vst [vmem:[#allocation5 + $0xc8] sm:$0xff] %v336_v36  ;;  %800 = vst [vmem:[#allocation5 + $0x48] sm:$0xff] %v304_v37 }
  0xb3   :  { %448 = vxpose.xlu1.b32.cont [10/16] %v106_v38, 128  ;;  %v337_v40 = vpop.trf.xlu1  ;;  %416 = vxpose.xlu0.b32.cont [10/16] %v105_v39, 128  ;;  %v305_v41 = vpop.trf.xlu0  ;;  %v138_v38 = vld [vmem:[#allocation2 + $0x398] sm:$0xff]  ;;  %v137_v39 = vld [vmem:[#allocation2 + $0x390] sm:$0xff] }
  0xb4   :  { %817 = vst [vmem:[#allocation5 + $0xd0] sm:$0xff] %v337_v40  ;;  %801 = vst [vmem:[#allocation5 + $0x50] sm:$0xff] %v305_v41 }
  0xb7   :  { %449 = vxpose.xlu1.b32.cont [11/16] %v108_v42, 128  ;;  %v338_v44 = vpop.trf.xlu1  ;;  %417 = vxpose.xlu0.b32.cont [11/16] %v107_v43, 128  ;;  %v306_v45 = vpop.trf.xlu0  ;;  %v140_v42 = vld [vmem:[#allocation2 + $0x3a8] sm:$0xff]  ;;  %v139_v43 = vld [vmem:[#allocation2 + $0x3a0] sm:$0xff] }
  0xb8   :  { %818 = vst [vmem:[#allocation5 + $0xd8] sm:$0xff] %v338_v44  ;;  %802 = vst [vmem:[#allocation5 + $0x58] sm:$0xff] %v306_v45 }
  0xbb   :  { %450 = vxpose.xlu1.b32.cont [12/16] %v110_v46, 128  ;;  %v339_v48 = vpop.trf.xlu1  ;;  %418 = vxpose.xlu0.b32.cont [12/16] %v109_v47, 128  ;;  %v307_v49 = vpop.trf.xlu0  ;;  %v142_v46 = vld [vmem:[#allocation2 + $0x3b8] sm:$0xff]  ;;  %v141_v47 = vld [vmem:[#allocation2 + $0x3b0] sm:$0xff] }
  0xbc   :  { %819 = vst [vmem:[#allocation5 + $0xe0] sm:$0xff] %v339_v48  ;;  %803 = vst [vmem:[#allocation5 + $0x60] sm:$0xff] %v307_v49 }
  0xbf   :  { %451 = vxpose.xlu1.b32.cont [13/16] %v112_v50, 128  ;;  %v340_v52 = vpop.trf.xlu1  ;;  %419 = vxpose.xlu0.b32.cont [13/16] %v111_v51, 128  ;;  %v308_v53 = vpop.trf.xlu0  ;;  %v144_v50 = vld [vmem:[#allocation2 + $0x3c8] sm:$0xff]  ;;  %v143_v51 = vld [vmem:[#allocation2 + $0x3c0] sm:$0xff] }
  0xc0   :  { %820 = vst [vmem:[#allocation5 + $0xe8] sm:$0xff] %v340_v52  ;;  %804 = vst [vmem:[#allocation5 + $0x68] sm:$0xff] %v308_v53 }
  0xc3   :  { %452 = vxpose.xlu1.b32.cont [14/16] %v114_v54, 128  ;;  %v341_v56 = vpop.trf.xlu1  ;;  %420 = vxpose.xlu0.b32.cont [14/16] %v113_v55, 128  ;;  %v309_v57 = vpop.trf.xlu0  ;;  %v146_v54 = vld [vmem:[#allocation2 + $0x3d8] sm:$0xff]  ;;  %v145_v55 = vld [vmem:[#allocation2 + $0x3d0] sm:$0xff] }
  0xc4   :  { %821 = vst [vmem:[#allocation5 + $0xf0] sm:$0xff] %v341_v56  ;;  %805 = vst [vmem:[#allocation5 + $0x70] sm:$0xff] %v309_v57 }
  0xc7   :  { %453 = vxpose.xlu1.b32.cont [15/16] %v116_v58, 128  ;;  %v342_v60 = vpop.trf.xlu1  ;;  %421 = vxpose.xlu0.b32.cont [15/16] %v115_v59, 128  ;;  %v310_v61 = vpop.trf.xlu0  ;;  %v148_v58 = vld [vmem:[#allocation2 + $0x3e8] sm:$0xff]  ;;  %v147_v59 = vld [vmem:[#allocation2 + $0x3e0] sm:$0xff] }
  0xc8   :  { %822 = vst [vmem:[#allocation5 + $0xf8] sm:$0xff] %v342_v60  ;;  %806 = vst [vmem:[#allocation5 + $0x78] sm:$0xff] %v310_v61 }
  0xcb   :  { %454 = vxpose.xlu1.b32.end [16/16] %v118_v62, 128  ;;  %v391_v0 = vpop.trf.xlu1  ;;  %422 = vxpose.xlu0.b32.end [16/16] %v117_v63, 128  ;;  %v359_v1 = vpop.trf.xlu0  ;;  %v150_v62 = vld [vmem:[#allocation2 + $0x3f8] sm:$0xff]  ;;  %v149_v63 = vld [vmem:[#allocation2 + $0x3f0] sm:$0xff] }
  0xcc   :  { %839 = vst [vmem:[#allocation5 + $0x180] sm:$0xff] %v391_v0  ;;  %823 = vst [vmem:[#allocation5 + $0x100] sm:$0xff] %v359_v1 }
  0xcf   :  { %503 = vxpose.xlu1.b32.start [1/16] %v120_v2, 128  ;;  %v392_v4 = vpop.trf.xlu1  ;;  %471 = vxpose.xlu0.b32.start [1/16] %v119_v3, 128  ;;  %v360_v5 = vpop.trf.xlu0  ;;  %v152_v2 = vld [vmem:[#allocation2 + $0x408] sm:$0xff]  ;;  %v151_v3 = vld [vmem:[#allocation2 + $0x400] sm:$0xff] }
  0xd0   :  { %840 = vst [vmem:[#allocation5 + $0x188] sm:$0xff] %v392_v4  ;;  %824 = vst [vmem:[#allocation5 + $0x108] sm:$0xff] %v360_v5 }
  0xd3   :  { %504 = vxpose.xlu1.b32.cont [2/16] %v122_v6, 128  ;;  %v393_v8 = vpop.trf.xlu1  ;;  %472 = vxpose.xlu0.b32.cont [2/16] %v121_v7, 128  ;;  %v361_v9 = vpop.trf.xlu0  ;;  %v154_v6 = vld [vmem:[#allocation2 + $0x418] sm:$0xff]  ;;  %v153_v7 = vld [vmem:[#allocation2 + $0x410] sm:$0xff] }
  0xd4   :  { %841 = vst [vmem:[#allocation5 + $0x190] sm:$0xff] %v393_v8  ;;  %825 = vst [vmem:[#allocation5 + $0x110] sm:$0xff] %v361_v9 }
  0xd7   :  { %505 = vxpose.xlu1.b32.cont [3/16] %v124_v10, 128  ;;  %v394_v12 = vpop.trf.xlu1  ;;  %473 = vxpose.xlu0.b32.cont [3/16] %v123_v11, 128  ;;  %v362_v13 = vpop.trf.xlu0  ;;  %v156_v10 = vld [vmem:[#allocation2 + $0x428] sm:$0xff]  ;;  %v155_v11 = vld [vmem:[#allocation2 + $0x420] sm:$0xff] }
  0xd8   :  { %842 = vst [vmem:[#allocation5 + $0x198] sm:$0xff] %v394_v12  ;;  %826 = vst [vmem:[#allocation5 + $0x118] sm:$0xff] %v362_v13 }
  0xdb   :  { %506 = vxpose.xlu1.b32.cont [4/16] %v126_v14, 128  ;;  %v395_v16 = vpop.trf.xlu1  ;;  %474 = vxpose.xlu0.b32.cont [4/16] %v125_v15, 128  ;;  %v363_v17 = vpop.trf.xlu0  ;;  %v158_v14 = vld [vmem:[#allocation2 + $0x438] sm:$0xff]  ;;  %v157_v15 = vld [vmem:[#allocation2 + $0x430] sm:$0xff] }
  0xdc   :  { %843 = vst [vmem:[#allocation5 + $0x1a0] sm:$0xff] %v395_v16  ;;  %827 = vst [vmem:[#allocation5 + $0x120] sm:$0xff] %v363_v17 }
  0xdf   :  { %507 = vxpose.xlu1.b32.cont [5/16] %v128_v18, 128  ;;  %v396_v20 = vpop.trf.xlu1  ;;  %475 = vxpose.xlu0.b32.cont [5/16] %v127_v19, 128  ;;  %v364_v21 = vpop.trf.xlu0  ;;  %v160_v18 = vld [vmem:[#allocation2 + $0x448] sm:$0xff]  ;;  %v159_v19 = vld [vmem:[#allocation2 + $0x440] sm:$0xff] }
  0xe0   :  { %844 = vst [vmem:[#allocation5 + $0x1a8] sm:$0xff] %v396_v20  ;;  %828 = vst [vmem:[#allocation5 + $0x128] sm:$0xff] %v364_v21 }
  0xe3   :  { %508 = vxpose.xlu1.b32.cont [6/16] %v130_v22, 128  ;;  %v397_v24 = vpop.trf.xlu1  ;;  %476 = vxpose.xlu0.b32.cont [6/16] %v129_v23, 128  ;;  %v365_v25 = vpop.trf.xlu0  ;;  %v162_v22 = vld [vmem:[#allocation2 + $0x458] sm:$0xff]  ;;  %v161_v23 = vld [vmem:[#allocation2 + $0x450] sm:$0xff] }
  0xe4   :  { %845 = vst [vmem:[#allocation5 + $0x1b0] sm:$0xff] %v397_v24  ;;  %829 = vst [vmem:[#allocation5 + $0x130] sm:$0xff] %v365_v25 }
  0xe7   :  { %509 = vxpose.xlu1.b32.cont [7/16] %v132_v26, 128  ;;  %v398_v28 = vpop.trf.xlu1  ;;  %477 = vxpose.xlu0.b32.cont [7/16] %v131_v27, 128  ;;  %v366_v29 = vpop.trf.xlu0  ;;  %v164_v26 = vld [vmem:[#allocation2 + $0x468] sm:$0xff]  ;;  %v163_v27 = vld [vmem:[#allocation2 + $0x460] sm:$0xff] }
  0xe8   :  { %846 = vst [vmem:[#allocation5 + $0x1b8] sm:$0xff] %v398_v28  ;;  %830 = vst [vmem:[#allocation5 + $0x138] sm:$0xff] %v366_v29 }
  0xeb   :  { %510 = vxpose.xlu1.b32.cont [8/16] %v134_v30, 128  ;;  %v399_v32 = vpop.trf.xlu1  ;;  %478 = vxpose.xlu0.b32.cont [8/16] %v133_v31, 128  ;;  %v367_v33 = vpop.trf.xlu0  ;;  %v166_v30 = vld [vmem:[#allocation2 + $0x478] sm:$0xff]  ;;  %v165_v31 = vld [vmem:[#allocation2 + $0x470] sm:$0xff] }
  0xec   :  { %847 = vst [vmem:[#allocation5 + $0x1c0] sm:$0xff] %v399_v32  ;;  %831 = vst [vmem:[#allocation5 + $0x140] sm:$0xff] %v367_v33 }
  0xef   :  { %511 = vxpose.xlu1.b32.cont [9/16] %v136_v34, 128  ;;  %v400_v36 = vpop.trf.xlu1  ;;  %479 = vxpose.xlu0.b32.cont [9/16] %v135_v35, 128  ;;  %v368_v37 = vpop.trf.xlu0  ;;  %v168_v34 = vld [vmem:[#allocation2 + $0x488] sm:$0xff]  ;;  %v167_v35 = vld [vmem:[#allocation2 + $0x480] sm:$0xff] }
  0xf0   :  { %848 = vst [vmem:[#allocation5 + $0x1c8] sm:$0xff] %v400_v36  ;;  %832 = vst [vmem:[#allocation5 + $0x148] sm:$0xff] %v368_v37 }
  0xf3   :  { %512 = vxpose.xlu1.b32.cont [10/16] %v138_v38, 128  ;;  %v401_v40 = vpop.trf.xlu1  ;;  %480 = vxpose.xlu0.b32.cont [10/16] %v137_v39, 128  ;;  %v369_v41 = vpop.trf.xlu0  ;;  %v170_v38 = vld [vmem:[#allocation2 + $0x498] sm:$0xff]  ;;  %v169_v39 = vld [vmem:[#allocation2 + $0x490] sm:$0xff] }
  0xf4   :  { %849 = vst [vmem:[#allocation5 + $0x1d0] sm:$0xff] %v401_v40  ;;  %833 = vst [vmem:[#allocation5 + $0x150] sm:$0xff] %v369_v41 }
  0xf7   :  { %513 = vxpose.xlu1.b32.cont [11/16] %v140_v42, 128  ;;  %v402_v44 = vpop.trf.xlu1  ;;  %481 = vxpose.xlu0.b32.cont [11/16] %v139_v43, 128  ;;  %v370_v45 = vpop.trf.xlu0  ;;  %v172_v42 = vld [vmem:[#allocation2 + $0x4a8] sm:$0xff]  ;;  %v171_v43 = vld [vmem:[#allocation2 + $0x4a0] sm:$0xff] }
  0xf8   :  { %850 = vst [vmem:[#allocation5 + $0x1d8] sm:$0xff] %v402_v44  ;;  %834 = vst [vmem:[#allocation5 + $0x158] sm:$0xff] %v370_v45 }
  0xfb   :  { %514 = vxpose.xlu1.b32.cont [12/16] %v142_v46, 128  ;;  %v403_v48 = vpop.trf.xlu1  ;;  %482 = vxpose.xlu0.b32.cont [12/16] %v141_v47, 128  ;;  %v371_v49 = vpop.trf.xlu0  ;;  %v174_v46 = vld [vmem:[#allocation2 + $0x4b8] sm:$0xff]  ;;  %v173_v47 = vld [vmem:[#allocation2 + $0x4b0] sm:$0xff] }
  0xfc   :  { %851 = vst [vmem:[#allocation5 + $0x1e0] sm:$0xff] %v403_v48  ;;  %835 = vst [vmem:[#allocation5 + $0x160] sm:$0xff] %v371_v49 }
  0xff   :  { %515 = vxpose.xlu1.b32.cont [13/16] %v144_v50, 128  ;;  %v404_v52 = vpop.trf.xlu1  ;;  %483 = vxpose.xlu0.b32.cont [13/16] %v143_v51, 128  ;;  %v372_v53 = vpop.trf.xlu0  ;;  %v176_v50 = vld [vmem:[#allocation2 + $0x4c8] sm:$0xff]  ;;  %v175_v51 = vld [vmem:[#allocation2 + $0x4c0] sm:$0xff] }
 0x100   :  { %852 = vst [vmem:[#allocation5 + $0x1e8] sm:$0xff] %v404_v52  ;;  %836 = vst [vmem:[#allocation5 + $0x168] sm:$0xff] %v372_v53 }
 0x103   :  { %516 = vxpose.xlu1.b32.cont [14/16] %v146_v54, 128  ;;  %v405_v56 = vpop.trf.xlu1  ;;  %484 = vxpose.xlu0.b32.cont [14/16] %v145_v55, 128  ;;  %v373_v57 = vpop.trf.xlu0  ;;  %v178_v54 = vld [vmem:[#allocation2 + $0x4d8] sm:$0xff]  ;;  %v177_v55 = vld [vmem:[#allocation2 + $0x4d0] sm:$0xff] }
 0x104   :  { %853 = vst [vmem:[#allocation5 + $0x1f0] sm:$0xff] %v405_v56  ;;  %837 = vst [vmem:[#allocation5 + $0x170] sm:$0xff] %v373_v57 }
 0x107   :  { %517 = vxpose.xlu1.b32.cont [15/16] %v148_v58, 128  ;;  %v406_v60 = vpop.trf.xlu1  ;;  %485 = vxpose.xlu0.b32.cont [15/16] %v147_v59, 128  ;;  %v374_v61 = vpop.trf.xlu0  ;;  %v180_v58 = vld [vmem:[#allocation2 + $0x4e8] sm:$0xff]  ;;  %v179_v59 = vld [vmem:[#allocation2 + $0x4e0] sm:$0xff] }
 0x108   :  { %854 = vst [vmem:[#allocation5 + $0x1f8] sm:$0xff] %v406_v60  ;;  %838 = vst [vmem:[#allocation5 + $0x178] sm:$0xff] %v374_v61 }
 0x10b   :  { %518 = vxpose.xlu1.b32.end [16/16] %v150_v62, 128  ;;  %v455_v0 = vpop.trf.xlu1  ;;  %486 = vxpose.xlu0.b32.end [16/16] %v149_v63, 128  ;;  %v423_v1 = vpop.trf.xlu0  ;;  %v182_v62 = vld [vmem:[#allocation2 + $0x4f8] sm:$0xff]  ;;  %v181_v63 = vld [vmem:[#allocation2 + $0x4f0] sm:$0xff] }
 0x10c   :  { %871 = vst [vmem:[#allocation5 + $0x280] sm:$0xff] %v455_v0  ;;  %855 = vst [vmem:[#allocation5 + $0x200] sm:$0xff] %v423_v1 }
 0x10f   :  { %567 = vxpose.xlu1.b32.start [1/16] %v152_v2, 128  ;;  %v456_v4 = vpop.trf.xlu1  ;;  %535 = vxpose.xlu0.b32.start [1/16] %v151_v3, 128  ;;  %v424_v5 = vpop.trf.xlu0  ;;  %v184_v2 = vld [vmem:[#allocation2 + $0x508] sm:$0xff]  ;;  %v183_v3 = vld [vmem:[#allocation2 + $0x500] sm:$0xff] }
 0x110   :  { %872 = vst [vmem:[#allocation5 + $0x288] sm:$0xff] %v456_v4  ;;  %856 = vst [vmem:[#allocation5 + $0x208] sm:$0xff] %v424_v5 }
 0x113   :  { %568 = vxpose.xlu1.b32.cont [2/16] %v154_v6, 128  ;;  %v457_v8 = vpop.trf.xlu1  ;;  %536 = vxpose.xlu0.b32.cont [2/16] %v153_v7, 128  ;;  %v425_v9 = vpop.trf.xlu0  ;;  %v186_v6 = vld [vmem:[#allocation2 + $0x518] sm:$0xff]  ;;  %v185_v7 = vld [vmem:[#allocation2 + $0x510] sm:$0xff] }
 0x114   :  { %873 = vst [vmem:[#allocation5 + $0x290] sm:$0xff] %v457_v8  ;;  %857 = vst [vmem:[#allocation5 + $0x210] sm:$0xff] %v425_v9 }
 0x117   :  { %569 = vxpose.xlu1.b32.cont [3/16] %v156_v10, 128  ;;  %v458_v12 = vpop.trf.xlu1  ;;  %537 = vxpose.xlu0.b32.cont [3/16] %v155_v11, 128  ;;  %v426_v13 = vpop.trf.xlu0  ;;  %v188_v10 = vld [vmem:[#allocation2 + $0x528] sm:$0xff]  ;;  %v187_v11 = vld [vmem:[#allocation2 + $0x520] sm:$0xff] }
 0x118   :  { %874 = vst [vmem:[#allocation5 + $0x298] sm:$0xff] %v458_v12  ;;  %858 = vst [vmem:[#allocation5 + $0x218] sm:$0xff] %v426_v13 }
 0x11b   :  { %570 = vxpose.xlu1.b32.cont [4/16] %v158_v14, 128  ;;  %v459_v16 = vpop.trf.xlu1  ;;  %538 = vxpose.xlu0.b32.cont [4/16] %v157_v15, 128  ;;  %v427_v17 = vpop.trf.xlu0  ;;  %v190_v14 = vld [vmem:[#allocation2 + $0x538] sm:$0xff]  ;;  %v189_v15 = vld [vmem:[#allocation2 + $0x530] sm:$0xff] }
 0x11c   :  { %875 = vst [vmem:[#allocation5 + $0x2a0] sm:$0xff] %v459_v16  ;;  %859 = vst [vmem:[#allocation5 + $0x220] sm:$0xff] %v427_v17 }
 0x11f   :  { %571 = vxpose.xlu1.b32.cont [5/16] %v160_v18, 128  ;;  %v460_v20 = vpop.trf.xlu1  ;;  %539 = vxpose.xlu0.b32.cont [5/16] %v159_v19, 128  ;;  %v428_v21 = vpop.trf.xlu0  ;;  %v192_v18 = vld [vmem:[#allocation2 + $0x548] sm:$0xff]  ;;  %v191_v19 = vld [vmem:[#allocation2 + $0x540] sm:$0xff] }
 0x120   :  { %876 = vst [vmem:[#allocation5 + $0x2a8] sm:$0xff] %v460_v20  ;;  %860 = vst [vmem:[#allocation5 + $0x228] sm:$0xff] %v428_v21 }
 0x123   :  { %572 = vxpose.xlu1.b32.cont [6/16] %v162_v22, 128  ;;  %v461_v24 = vpop.trf.xlu1  ;;  %540 = vxpose.xlu0.b32.cont [6/16] %v161_v23, 128  ;;  %v429_v25 = vpop.trf.xlu0  ;;  %v194_v22 = vld [vmem:[#allocation2 + $0x558] sm:$0xff]  ;;  %v193_v23 = vld [vmem:[#allocation2 + $0x550] sm:$0xff] }
 0x124   :  { %877 = vst [vmem:[#allocation5 + $0x2b0] sm:$0xff] %v461_v24  ;;  %861 = vst [vmem:[#allocation5 + $0x230] sm:$0xff] %v429_v25 }
 0x127   :  { %573 = vxpose.xlu1.b32.cont [7/16] %v164_v26, 128  ;;  %v462_v28 = vpop.trf.xlu1  ;;  %541 = vxpose.xlu0.b32.cont [7/16] %v163_v27, 128  ;;  %v430_v29 = vpop.trf.xlu0  ;;  %v196_v26 = vld [vmem:[#allocation2 + $0x568] sm:$0xff]  ;;  %v195_v27 = vld [vmem:[#allocation2 + $0x560] sm:$0xff] }
 0x128   :  { %878 = vst [vmem:[#allocation5 + $0x2b8] sm:$0xff] %v462_v28  ;;  %862 = vst [vmem:[#allocation5 + $0x238] sm:$0xff] %v430_v29 }
 0x12b   :  { %574 = vxpose.xlu1.b32.cont [8/16] %v166_v30, 128  ;;  %v463_v32 = vpop.trf.xlu1  ;;  %542 = vxpose.xlu0.b32.cont [8/16] %v165_v31, 128  ;;  %v431_v33 = vpop.trf.xlu0  ;;  %v198_v30 = vld [vmem:[#allocation2 + $0x578] sm:$0xff]  ;;  %v197_v31 = vld [vmem:[#allocation2 + $0x570] sm:$0xff] }
 0x12c   :  { %879 = vst [vmem:[#allocation5 + $0x2c0] sm:$0xff] %v463_v32  ;;  %863 = vst [vmem:[#allocation5 + $0x240] sm:$0xff] %v431_v33 }
 0x12f   :  { %575 = vxpose.xlu1.b32.cont [9/16] %v168_v34, 128  ;;  %v464_v36 = vpop.trf.xlu1  ;;  %543 = vxpose.xlu0.b32.cont [9/16] %v167_v35, 128  ;;  %v432_v37 = vpop.trf.xlu0  ;;  %v200_v34 = vld [vmem:[#allocation2 + $0x588] sm:$0xff]  ;;  %v199_v35 = vld [vmem:[#allocation2 + $0x580] sm:$0xff] }
 0x130   :  { %880 = vst [vmem:[#allocation5 + $0x2c8] sm:$0xff] %v464_v36  ;;  %864 = vst [vmem:[#allocation5 + $0x248] sm:$0xff] %v432_v37 }
 0x133   :  { %576 = vxpose.xlu1.b32.cont [10/16] %v170_v38, 128  ;;  %v465_v40 = vpop.trf.xlu1  ;;  %544 = vxpose.xlu0.b32.cont [10/16] %v169_v39, 128  ;;  %v433_v41 = vpop.trf.xlu0  ;;  %v202_v38 = vld [vmem:[#allocation2 + $0x598] sm:$0xff]  ;;  %v201_v39 = vld [vmem:[#allocation2 + $0x590] sm:$0xff] }
 0x134   :  { %881 = vst [vmem:[#allocation5 + $0x2d0] sm:$0xff] %v465_v40  ;;  %865 = vst [vmem:[#allocation5 + $0x250] sm:$0xff] %v433_v41 }
 0x137   :  { %577 = vxpose.xlu1.b32.cont [11/16] %v172_v42, 128  ;;  %v466_v44 = vpop.trf.xlu1  ;;  %545 = vxpose.xlu0.b32.cont [11/16] %v171_v43, 128  ;;  %v434_v45 = vpop.trf.xlu0  ;;  %v204_v42 = vld [vmem:[#allocation2 + $0x5a8] sm:$0xff]  ;;  %v203_v43 = vld [vmem:[#allocation2 + $0x5a0] sm:$0xff] }
 0x138   :  { %882 = vst [vmem:[#allocation5 + $0x2d8] sm:$0xff] %v466_v44  ;;  %866 = vst [vmem:[#allocation5 + $0x258] sm:$0xff] %v434_v45 }
 0x13b   :  { %578 = vxpose.xlu1.b32.cont [12/16] %v174_v46, 128  ;;  %v467_v48 = vpop.trf.xlu1  ;;  %546 = vxpose.xlu0.b32.cont [12/16] %v173_v47, 128  ;;  %v435_v49 = vpop.trf.xlu0  ;;  %v206_v46 = vld [vmem:[#allocation2 + $0x5b8] sm:$0xff]  ;;  %v205_v47 = vld [vmem:[#allocation2 + $0x5b0] sm:$0xff] }
 0x13c   :  { %883 = vst [vmem:[#allocation5 + $0x2e0] sm:$0xff] %v467_v48  ;;  %867 = vst [vmem:[#allocation5 + $0x260] sm:$0xff] %v435_v49 }
 0x13f   :  { %579 = vxpose.xlu1.b32.cont [13/16] %v176_v50, 128  ;;  %v468_v52 = vpop.trf.xlu1  ;;  %547 = vxpose.xlu0.b32.cont [13/16] %v175_v51, 128  ;;  %v436_v53 = vpop.trf.xlu0  ;;  %v208_v50 = vld [vmem:[#allocation2 + $0x5c8] sm:$0xff]  ;;  %v207_v51 = vld [vmem:[#allocation2 + $0x5c0] sm:$0xff] }
 0x140   :  { %884 = vst [vmem:[#allocation5 + $0x2e8] sm:$0xff] %v468_v52  ;;  %868 = vst [vmem:[#allocation5 + $0x268] sm:$0xff] %v436_v53 }
 0x143   :  { %580 = vxpose.xlu1.b32.cont [14/16] %v178_v54, 128  ;;  %v469_v56 = vpop.trf.xlu1  ;;  %548 = vxpose.xlu0.b32.cont [14/16] %v177_v55, 128  ;;  %v437_v57 = vpop.trf.xlu0  ;;  %v210_v54 = vld [vmem:[#allocation2 + $0x5d8] sm:$0xff]  ;;  %v209_v55 = vld [vmem:[#allocation2 + $0x5d0] sm:$0xff] }
 0x144   :  { %885 = vst [vmem:[#allocation5 + $0x2f0] sm:$0xff] %v469_v56  ;;  %869 = vst [vmem:[#allocation5 + $0x270] sm:$0xff] %v437_v57 }
 0x147   :  { %581 = vxpose.xlu1.b32.cont [15/16] %v180_v58, 128  ;;  %v470_v60 = vpop.trf.xlu1  ;;  %549 = vxpose.xlu0.b32.cont [15/16] %v179_v59, 128  ;;  %v438_v61 = vpop.trf.xlu0  ;;  %v212_v58 = vld [vmem:[#allocation2 + $0x5e8] sm:$0xff]  ;;  %v211_v59 = vld [vmem:[#allocation2 + $0x5e0] sm:$0xff] }
 0x148   :  { %886 = vst [vmem:[#allocation5 + $0x2f8] sm:$0xff] %v470_v60  ;;  %870 = vst [vmem:[#allocation5 + $0x278] sm:$0xff] %v438_v61 }
 0x14b   :  { %582 = vxpose.xlu1.b32.end [16/16] %v182_v62, 128  ;;  %v519_v0 = vpop.trf.xlu1  ;;  %550 = vxpose.xlu0.b32.end [16/16] %v181_v63, 128  ;;  %v487_v1 = vpop.trf.xlu0  ;;  %v214_v62 = vld [vmem:[#allocation2 + $0x5f8] sm:$0xff]  ;;  %v213_v63 = vld [vmem:[#allocation2 + $0x5f0] sm:$0xff] }
 0x14c   :  { %903 = vst [vmem:[#allocation5 + $0x380] sm:$0xff] %v519_v0  ;;  %887 = vst [vmem:[#allocation5 + $0x300] sm:$0xff] %v487_v1 }
 0x14f   :  { %631 = vxpose.xlu1.b32.start [1/16] %v184_v2, 128  ;;  %v520_v4 = vpop.trf.xlu1  ;;  %599 = vxpose.xlu0.b32.start [1/16] %v183_v3, 128  ;;  %v488_v5 = vpop.trf.xlu0  ;;  %v216_v2 = vld [vmem:[#allocation2 + $0x608] sm:$0xff]  ;;  %v215_v3 = vld [vmem:[#allocation2 + $0x600] sm:$0xff] }
 0x150   :  { %904 = vst [vmem:[#allocation5 + $0x388] sm:$0xff] %v520_v4  ;;  %888 = vst [vmem:[#allocation5 + $0x308] sm:$0xff] %v488_v5 }
 0x153   :  { %632 = vxpose.xlu1.b32.cont [2/16] %v186_v6, 128  ;;  %v521_v8 = vpop.trf.xlu1  ;;  %600 = vxpose.xlu0.b32.cont [2/16] %v185_v7, 128  ;;  %v489_v9 = vpop.trf.xlu0  ;;  %v218_v6 = vld [vmem:[#allocation2 + $0x618] sm:$0xff]  ;;  %v217_v7 = vld [vmem:[#allocation2 + $0x610] sm:$0xff] }
 0x154   :  { %905 = vst [vmem:[#allocation5 + $0x390] sm:$0xff] %v521_v8  ;;  %889 = vst [vmem:[#allocation5 + $0x310] sm:$0xff] %v489_v9 }
 0x157   :  { %633 = vxpose.xlu1.b32.cont [3/16] %v188_v10, 128  ;;  %v522_v12 = vpop.trf.xlu1  ;;  %601 = vxpose.xlu0.b32.cont [3/16] %v187_v11, 128  ;;  %v490_v13 = vpop.trf.xlu0  ;;  %v220_v10 = vld [vmem:[#allocation2 + $0x628] sm:$0xff]  ;;  %v219_v11 = vld [vmem:[#allocation2 + $0x620] sm:$0xff] }
 0x158   :  { %906 = vst [vmem:[#allocation5 + $0x398] sm:$0xff] %v522_v12  ;;  %890 = vst [vmem:[#allocation5 + $0x318] sm:$0xff] %v490_v13 }
 0x15b   :  { %634 = vxpose.xlu1.b32.cont [4/16] %v190_v14, 128  ;;  %v523_v16 = vpop.trf.xlu1  ;;  %602 = vxpose.xlu0.b32.cont [4/16] %v189_v15, 128  ;;  %v491_v17 = vpop.trf.xlu0  ;;  %v222_v14 = vld [vmem:[#allocation2 + $0x638] sm:$0xff]  ;;  %v221_v15 = vld [vmem:[#allocation2 + $0x630] sm:$0xff] }
 0x15c   :  { %907 = vst [vmem:[#allocation5 + $0x3a0] sm:$0xff] %v523_v16  ;;  %891 = vst [vmem:[#allocation5 + $0x320] sm:$0xff] %v491_v17 }
 0x15f   :  { %635 = vxpose.xlu1.b32.cont [5/16] %v192_v18, 128  ;;  %v524_v20 = vpop.trf.xlu1  ;;  %603 = vxpose.xlu0.b32.cont [5/16] %v191_v19, 128  ;;  %v492_v21 = vpop.trf.xlu0  ;;  %v224_v18 = vld [vmem:[#allocation2 + $0x648] sm:$0xff]  ;;  %v223_v19 = vld [vmem:[#allocation2 + $0x640] sm:$0xff] }
 0x160   :  { %908 = vst [vmem:[#allocation5 + $0x3a8] sm:$0xff] %v524_v20  ;;  %892 = vst [vmem:[#allocation5 + $0x328] sm:$0xff] %v492_v21 }
 0x163   :  { %636 = vxpose.xlu1.b32.cont [6/16] %v194_v22, 128  ;;  %v525_v24 = vpop.trf.xlu1  ;;  %604 = vxpose.xlu0.b32.cont [6/16] %v193_v23, 128  ;;  %v493_v25 = vpop.trf.xlu0  ;;  %v226_v22 = vld [vmem:[#allocation2 + $0x658] sm:$0xff]  ;;  %v225_v23 = vld [vmem:[#allocation2 + $0x650] sm:$0xff] }
 0x164   :  { %909 = vst [vmem:[#allocation5 + $0x3b0] sm:$0xff] %v525_v24  ;;  %893 = vst [vmem:[#allocation5 + $0x330] sm:$0xff] %v493_v25 }
 0x167   :  { %637 = vxpose.xlu1.b32.cont [7/16] %v196_v26, 128  ;;  %v526_v28 = vpop.trf.xlu1  ;;  %605 = vxpose.xlu0.b32.cont [7/16] %v195_v27, 128  ;;  %v494_v29 = vpop.trf.xlu0  ;;  %v228_v26 = vld [vmem:[#allocation2 + $0x668] sm:$0xff]  ;;  %v227_v27 = vld [vmem:[#allocation2 + $0x660] sm:$0xff] }
 0x168   :  { %910 = vst [vmem:[#allocation5 + $0x3b8] sm:$0xff] %v526_v28  ;;  %894 = vst [vmem:[#allocation5 + $0x338] sm:$0xff] %v494_v29 }
 0x16b   :  { %638 = vxpose.xlu1.b32.cont [8/16] %v198_v30, 128  ;;  %v527_v32 = vpop.trf.xlu1  ;;  %606 = vxpose.xlu0.b32.cont [8/16] %v197_v31, 128  ;;  %v495_v33 = vpop.trf.xlu0  ;;  %v230_v30 = vld [vmem:[#allocation2 + $0x678] sm:$0xff]  ;;  %v229_v31 = vld [vmem:[#allocation2 + $0x670] sm:$0xff] }
 0x16c   :  { %911 = vst [vmem:[#allocation5 + $0x3c0] sm:$0xff] %v527_v32  ;;  %895 = vst [vmem:[#allocation5 + $0x340] sm:$0xff] %v495_v33 }
 0x16f   :  { %639 = vxpose.xlu1.b32.cont [9/16] %v200_v34, 128  ;;  %v528_v36 = vpop.trf.xlu1  ;;  %607 = vxpose.xlu0.b32.cont [9/16] %v199_v35, 128  ;;  %v496_v37 = vpop.trf.xlu0  ;;  %v232_v34 = vld [vmem:[#allocation2 + $0x688] sm:$0xff]  ;;  %v231_v35 = vld [vmem:[#allocation2 + $0x680] sm:$0xff] }
 0x170   :  { %912 = vst [vmem:[#allocation5 + $0x3c8] sm:$0xff] %v528_v36  ;;  %896 = vst [vmem:[#allocation5 + $0x348] sm:$0xff] %v496_v37 }
 0x173   :  { %640 = vxpose.xlu1.b32.cont [10/16] %v202_v38, 128  ;;  %v529_v40 = vpop.trf.xlu1  ;;  %608 = vxpose.xlu0.b32.cont [10/16] %v201_v39, 128  ;;  %v497_v41 = vpop.trf.xlu0  ;;  %v234_v38 = vld [vmem:[#allocation2 + $0x698] sm:$0xff]  ;;  %v233_v39 = vld [vmem:[#allocation2 + $0x690] sm:$0xff] }
 0x174   :  { %913 = vst [vmem:[#allocation5 + $0x3d0] sm:$0xff] %v529_v40  ;;  %897 = vst [vmem:[#allocation5 + $0x350] sm:$0xff] %v497_v41 }
 0x177   :  { %641 = vxpose.xlu1.b32.cont [11/16] %v204_v42, 128  ;;  %v530_v44 = vpop.trf.xlu1  ;;  %609 = vxpose.xlu0.b32.cont [11/16] %v203_v43, 128  ;;  %v498_v45 = vpop.trf.xlu0  ;;  %v236_v42 = vld [vmem:[#allocation2 + $0x6a8] sm:$0xff]  ;;  %v235_v43 = vld [vmem:[#allocation2 + $0x6a0] sm:$0xff] }
 0x178   :  { %914 = vst [vmem:[#allocation5 + $0x3d8] sm:$0xff] %v530_v44  ;;  %898 = vst [vmem:[#allocation5 + $0x358] sm:$0xff] %v498_v45 }
 0x17b   :  { %642 = vxpose.xlu1.b32.cont [12/16] %v206_v46, 128  ;;  %v531_v48 = vpop.trf.xlu1  ;;  %610 = vxpose.xlu0.b32.cont [12/16] %v205_v47, 128  ;;  %v499_v49 = vpop.trf.xlu0  ;;  %v238_v46 = vld [vmem:[#allocation2 + $0x6b8] sm:$0xff]  ;;  %v237_v47 = vld [vmem:[#allocation2 + $0x6b0] sm:$0xff] }
 0x17c   :  { %915 = vst [vmem:[#allocation5 + $0x3e0] sm:$0xff] %v531_v48  ;;  %899 = vst [vmem:[#allocation5 + $0x360] sm:$0xff] %v499_v49 }
 0x17f   :  { %643 = vxpose.xlu1.b32.cont [13/16] %v208_v50, 128  ;;  %v532_v52 = vpop.trf.xlu1  ;;  %611 = vxpose.xlu0.b32.cont [13/16] %v207_v51, 128  ;;  %v500_v53 = vpop.trf.xlu0  ;;  %v240_v50 = vld [vmem:[#allocation2 + $0x6c8] sm:$0xff]  ;;  %v239_v51 = vld [vmem:[#allocation2 + $0x6c0] sm:$0xff] }
 0x180   :  { %916 = vst [vmem:[#allocation5 + $0x3e8] sm:$0xff] %v532_v52  ;;  %900 = vst [vmem:[#allocation5 + $0x368] sm:$0xff] %v500_v53 }
 0x183   :  { %644 = vxpose.xlu1.b32.cont [14/16] %v210_v54, 128  ;;  %v533_v56 = vpop.trf.xlu1  ;;  %612 = vxpose.xlu0.b32.cont [14/16] %v209_v55, 128  ;;  %v501_v57 = vpop.trf.xlu0  ;;  %v242_v54 = vld [vmem:[#allocation2 + $0x6d8] sm:$0xff]  ;;  %v241_v55 = vld [vmem:[#allocation2 + $0x6d0] sm:$0xff] }
 0x184   :  { %917 = vst [vmem:[#allocation5 + $0x3f0] sm:$0xff] %v533_v56  ;;  %901 = vst [vmem:[#allocation5 + $0x370] sm:$0xff] %v501_v57 }
 0x187   :  { %645 = vxpose.xlu1.b32.cont [15/16] %v212_v58, 128  ;;  %v534_v60 = vpop.trf.xlu1  ;;  %613 = vxpose.xlu0.b32.cont [15/16] %v211_v59, 128  ;;  %v502_v61 = vpop.trf.xlu0  ;;  %v244_v58 = vld [vmem:[#allocation2 + $0x6e8] sm:$0xff]  ;;  %v243_v59 = vld [vmem:[#allocation2 + $0x6e0] sm:$0xff] }
 0x188   :  { %918 = vst [vmem:[#allocation5 + $0x3f8] sm:$0xff] %v534_v60  ;;  %902 = vst [vmem:[#allocation5 + $0x378] sm:$0xff] %v502_v61 }
 0x18b   :  { %646 = vxpose.xlu1.b32.end [16/16] %v214_v62, 128  ;;  %v583_v0 = vpop.trf.xlu1  ;;  %614 = vxpose.xlu0.b32.end [16/16] %v213_v63, 128  ;;  %v551_v1 = vpop.trf.xlu0  ;;  %v246_v62 = vld [vmem:[#allocation2 + $0x6f8] sm:$0xff]  ;;  %v245_v63 = vld [vmem:[#allocation2 + $0x6f0] sm:$0xff] }
 0x18c   :  { %935 = vst [vmem:[#allocation5 + $0x480] sm:$0xff] %v583_v0  ;;  %919 = vst [vmem:[#allocation5 + $0x400] sm:$0xff] %v551_v1 }
 0x18f   :  { %695 = vxpose.xlu1.b32.start [1/16] %v216_v2, 128  ;;  %v584_v4 = vpop.trf.xlu1  ;;  %663 = vxpose.xlu0.b32.start [1/16] %v215_v3, 128  ;;  %v552_v5 = vpop.trf.xlu0  ;;  %v248_v2 = vld [vmem:[#allocation2 + $0x708] sm:$0xff]  ;;  %v247_v3 = vld [vmem:[#allocation2 + $0x700] sm:$0xff] }
 0x190   :  { %936 = vst [vmem:[#allocation5 + $0x488] sm:$0xff] %v584_v4  ;;  %920 = vst [vmem:[#allocation5 + $0x408] sm:$0xff] %v552_v5 }
 0x193   :  { %696 = vxpose.xlu1.b32.cont [2/16] %v218_v6, 128  ;;  %v585_v8 = vpop.trf.xlu1  ;;  %664 = vxpose.xlu0.b32.cont [2/16] %v217_v7, 128  ;;  %v553_v9 = vpop.trf.xlu0  ;;  %v250_v6 = vld [vmem:[#allocation2 + $0x718] sm:$0xff]  ;;  %v249_v7 = vld [vmem:[#allocation2 + $0x710] sm:$0xff] }
 0x194   :  { %937 = vst [vmem:[#allocation5 + $0x490] sm:$0xff] %v585_v8  ;;  %921 = vst [vmem:[#allocation5 + $0x410] sm:$0xff] %v553_v9 }
 0x197   :  { %697 = vxpose.xlu1.b32.cont [3/16] %v220_v10, 128  ;;  %v586_v12 = vpop.trf.xlu1  ;;  %665 = vxpose.xlu0.b32.cont [3/16] %v219_v11, 128  ;;  %v554_v13 = vpop.trf.xlu0  ;;  %v252_v10 = vld [vmem:[#allocation2 + $0x728] sm:$0xff]  ;;  %v251_v11 = vld [vmem:[#allocation2 + $0x720] sm:$0xff] }
 0x198   :  { %938 = vst [vmem:[#allocation5 + $0x498] sm:$0xff] %v586_v12  ;;  %922 = vst [vmem:[#allocation5 + $0x418] sm:$0xff] %v554_v13 }
 0x19b   :  { %698 = vxpose.xlu1.b32.cont [4/16] %v222_v14, 128  ;;  %v587_v16 = vpop.trf.xlu1  ;;  %666 = vxpose.xlu0.b32.cont [4/16] %v221_v15, 128  ;;  %v555_v17 = vpop.trf.xlu0  ;;  %v254_v14 = vld [vmem:[#allocation2 + $0x738] sm:$0xff]  ;;  %v253_v15 = vld [vmem:[#allocation2 + $0x730] sm:$0xff] }
 0x19c   :  { %939 = vst [vmem:[#allocation5 + $0x4a0] sm:$0xff] %v587_v16  ;;  %923 = vst [vmem:[#allocation5 + $0x420] sm:$0xff] %v555_v17 }
 0x19f   :  { %699 = vxpose.xlu1.b32.cont [5/16] %v224_v18, 128  ;;  %v588_v20 = vpop.trf.xlu1  ;;  %667 = vxpose.xlu0.b32.cont [5/16] %v223_v19, 128  ;;  %v556_v21 = vpop.trf.xlu0  ;;  %v256_v18 = vld [vmem:[#allocation2 + $0x748] sm:$0xff]  ;;  %v255_v19 = vld [vmem:[#allocation2 + $0x740] sm:$0xff] }
 0x1a0   :  { %940 = vst [vmem:[#allocation5 + $0x4a8] sm:$0xff] %v588_v20  ;;  %924 = vst [vmem:[#allocation5 + $0x428] sm:$0xff] %v556_v21 }
 0x1a3   :  { %700 = vxpose.xlu1.b32.cont [6/16] %v226_v22, 128  ;;  %v589_v24 = vpop.trf.xlu1  ;;  %668 = vxpose.xlu0.b32.cont [6/16] %v225_v23, 128  ;;  %v557_v25 = vpop.trf.xlu0  ;;  %v258_v22 = vld [vmem:[#allocation2 + $0x758] sm:$0xff]  ;;  %v257_v23 = vld [vmem:[#allocation2 + $0x750] sm:$0xff] }
 0x1a4   :  { %941 = vst [vmem:[#allocation5 + $0x4b0] sm:$0xff] %v589_v24  ;;  %925 = vst [vmem:[#allocation5 + $0x430] sm:$0xff] %v557_v25 }
 0x1a7   :  { %701 = vxpose.xlu1.b32.cont [7/16] %v228_v26, 128  ;;  %v590_v28 = vpop.trf.xlu1  ;;  %669 = vxpose.xlu0.b32.cont [7/16] %v227_v27, 128  ;;  %v558_v29 = vpop.trf.xlu0  ;;  %v260_v26 = vld [vmem:[#allocation2 + $0x768] sm:$0xff]  ;;  %v259_v27 = vld [vmem:[#allocation2 + $0x760] sm:$0xff] }
 0x1a8   :  { %942 = vst [vmem:[#allocation5 + $0x4b8] sm:$0xff] %v590_v28  ;;  %926 = vst [vmem:[#allocation5 + $0x438] sm:$0xff] %v558_v29 }
 0x1ab   :  { %702 = vxpose.xlu1.b32.cont [8/16] %v230_v30, 128  ;;  %v591_v32 = vpop.trf.xlu1  ;;  %670 = vxpose.xlu0.b32.cont [8/16] %v229_v31, 128  ;;  %v559_v33 = vpop.trf.xlu0  ;;  %v262_v30 = vld [vmem:[#allocation2 + $0x778] sm:$0xff]  ;;  %v261_v31 = vld [vmem:[#allocation2 + $0x770] sm:$0xff] }
 0x1ac   :  { %943 = vst [vmem:[#allocation5 + $0x4c0] sm:$0xff] %v591_v32  ;;  %927 = vst [vmem:[#allocation5 + $0x440] sm:$0xff] %v559_v33 }
 0x1af   :  { %703 = vxpose.xlu1.b32.cont [9/16] %v232_v34, 128  ;;  %v592_v36 = vpop.trf.xlu1  ;;  %671 = vxpose.xlu0.b32.cont [9/16] %v231_v35, 128  ;;  %v560_v37 = vpop.trf.xlu0  ;;  %v264_v34 = vld [vmem:[#allocation2 + $0x788] sm:$0xff]  ;;  %v263_v35 = vld [vmem:[#allocation2 + $0x780] sm:$0xff] }
 0x1b0   :  { %944 = vst [vmem:[#allocation5 + $0x4c8] sm:$0xff] %v592_v36  ;;  %928 = vst [vmem:[#allocation5 + $0x448] sm:$0xff] %v560_v37 }
 0x1b3   :  { %704 = vxpose.xlu1.b32.cont [10/16] %v234_v38, 128  ;;  %v593_v40 = vpop.trf.xlu1  ;;  %672 = vxpose.xlu0.b32.cont [10/16] %v233_v39, 128  ;;  %v561_v41 = vpop.trf.xlu0  ;;  %v266_v38 = vld [vmem:[#allocation2 + $0x798] sm:$0xff]  ;;  %v265_v39 = vld [vmem:[#allocation2 + $0x790] sm:$0xff] }
 0x1b4   :  { %945 = vst [vmem:[#allocation5 + $0x4d0] sm:$0xff] %v593_v40  ;;  %929 = vst [vmem:[#allocation5 + $0x450] sm:$0xff] %v561_v41 }
 0x1b7   :  { %705 = vxpose.xlu1.b32.cont [11/16] %v236_v42, 128  ;;  %v594_v44 = vpop.trf.xlu1  ;;  %673 = vxpose.xlu0.b32.cont [11/16] %v235_v43, 128  ;;  %v562_v45 = vpop.trf.xlu0  ;;  %v268_v42 = vld [vmem:[#allocation2 + $0x7a8] sm:$0xff]  ;;  %v267_v43 = vld [vmem:[#allocation2 + $0x7a0] sm:$0xff] }
 0x1b8   :  { %946 = vst [vmem:[#allocation5 + $0x4d8] sm:$0xff] %v594_v44  ;;  %930 = vst [vmem:[#allocation5 + $0x458] sm:$0xff] %v562_v45 }
 0x1bb   :  { %706 = vxpose.xlu1.b32.cont [12/16] %v238_v46, 128  ;;  %v595_v48 = vpop.trf.xlu1  ;;  %674 = vxpose.xlu0.b32.cont [12/16] %v237_v47, 128  ;;  %v563_v49 = vpop.trf.xlu0  ;;  %v270_v46 = vld [vmem:[#allocation2 + $0x7b8] sm:$0xff]  ;;  %v269_v47 = vld [vmem:[#allocation2 + $0x7b0] sm:$0xff] }
 0x1bc   :  { %947 = vst [vmem:[#allocation5 + $0x4e0] sm:$0xff] %v595_v48  ;;  %931 = vst [vmem:[#allocation5 + $0x460] sm:$0xff] %v563_v49 }
 0x1bf   :  { %707 = vxpose.xlu1.b32.cont [13/16] %v240_v50, 128  ;;  %v596_v52 = vpop.trf.xlu1  ;;  %675 = vxpose.xlu0.b32.cont [13/16] %v239_v51, 128  ;;  %v564_v53 = vpop.trf.xlu0  ;;  %v272_v50 = vld [vmem:[#allocation2 + $0x7c8] sm:$0xff]  ;;  %v271_v51 = vld [vmem:[#allocation2 + $0x7c0] sm:$0xff] }
 0x1c0   :  { %948 = vst [vmem:[#allocation5 + $0x4e8] sm:$0xff] %v596_v52  ;;  %932 = vst [vmem:[#allocation5 + $0x468] sm:$0xff] %v564_v53 }
 0x1c3   :  { %708 = vxpose.xlu1.b32.cont [14/16] %v242_v54, 128  ;;  %v597_v56 = vpop.trf.xlu1  ;;  %676 = vxpose.xlu0.b32.cont [14/16] %v241_v55, 128  ;;  %v565_v57 = vpop.trf.xlu0  ;;  %v274_v54 = vld [vmem:[#allocation2 + $0x7d8] sm:$0xff]  ;;  %v273_v55 = vld [vmem:[#allocation2 + $0x7d0] sm:$0xff] }
 0x1c4   :  { %949 = vst [vmem:[#allocation5 + $0x4f0] sm:$0xff] %v597_v56  ;;  %933 = vst [vmem:[#allocation5 + $0x470] sm:$0xff] %v565_v57 }
 0x1c7   :  { %709 = vxpose.xlu1.b32.cont [15/16] %v244_v58, 128  ;;  %v598_v60 = vpop.trf.xlu1  ;;  %677 = vxpose.xlu0.b32.cont [15/16] %v243_v59, 128  ;;  %v566_v61 = vpop.trf.xlu0  ;;  %v276_v58 = vld [vmem:[#allocation2 + $0x7e8] sm:$0xff]  ;;  %v275_v59 = vld [vmem:[#allocation2 + $0x7e0] sm:$0xff] }
 0x1c8   :  { %950 = vst [vmem:[#allocation5 + $0x4f8] sm:$0xff] %v598_v60  ;;  %934 = vst [vmem:[#allocation5 + $0x478] sm:$0xff] %v566_v61 }
 0x1cb   :  { %710 = vxpose.xlu1.b32.end [16/16] %v246_v62, 128  ;;  %v647_v0 = vpop.trf.xlu1  ;;  %678 = vxpose.xlu0.b32.end [16/16] %v245_v63, 128  ;;  %v615_v1 = vpop.trf.xlu0  ;;  %v278_v62 = vld [vmem:[#allocation2 + $0x7f8] sm:$0xff]  ;;  %v277_v63 = vld [vmem:[#allocation2 + $0x7f0] sm:$0xff] }
 0x1cc   :  { %967 = vst [vmem:[#allocation5 + $0x580] sm:$0xff] %v647_v0  ;;  %951 = vst [vmem:[#allocation5 + $0x500] sm:$0xff] %v615_v1 }
 0x1cf   :  { %759 = vxpose.xlu1.b32.start [1/16] %v248_v2, 128  ;;  %v648_v4 = vpop.trf.xlu1  ;;  %727 = vxpose.xlu0.b32.start [1/16] %v247_v3, 128  ;;  %v616_v5 = vpop.trf.xlu0 }
 0x1d0   :  { %968 = vst [vmem:[#allocation5 + $0x588] sm:$0xff] %v648_v4  ;;  %952 = vst [vmem:[#allocation5 + $0x508] sm:$0xff] %v616_v5 }
 0x1d3   :  { %760 = vxpose.xlu1.b32.cont [2/16] %v250_v6, 128  ;;  %v649_v8 = vpop.trf.xlu1  ;;  %728 = vxpose.xlu0.b32.cont [2/16] %v249_v7, 128  ;;  %v617_v9 = vpop.trf.xlu0 }
 0x1d4   :  { %969 = vst [vmem:[#allocation5 + $0x590] sm:$0xff] %v649_v8  ;;  %953 = vst [vmem:[#allocation5 + $0x510] sm:$0xff] %v617_v9 }
 0x1d7   :  { %761 = vxpose.xlu1.b32.cont [3/16] %v252_v10, 128  ;;  %v650_v12 = vpop.trf.xlu1  ;;  %729 = vxpose.xlu0.b32.cont [3/16] %v251_v11, 128  ;;  %v618_v13 = vpop.trf.xlu0 }
 0x1d8   :  { %970 = vst [vmem:[#allocation5 + $0x598] sm:$0xff] %v650_v12  ;;  %954 = vst [vmem:[#allocation5 + $0x518] sm:$0xff] %v618_v13 }
 0x1db   :  { %762 = vxpose.xlu1.b32.cont [4/16] %v254_v14, 128  ;;  %v651_v16 = vpop.trf.xlu1  ;;  %730 = vxpose.xlu0.b32.cont [4/16] %v253_v15, 128  ;;  %v619_v17 = vpop.trf.xlu0 }
 0x1dc   :  { %971 = vst [vmem:[#allocation5 + $0x5a0] sm:$0xff] %v651_v16  ;;  %955 = vst [vmem:[#allocation5 + $0x520] sm:$0xff] %v619_v17 }
 0x1df   :  { %763 = vxpose.xlu1.b32.cont [5/16] %v256_v18, 128  ;;  %v652_v20 = vpop.trf.xlu1  ;;  %731 = vxpose.xlu0.b32.cont [5/16] %v255_v19, 128  ;;  %v620_v21 = vpop.trf.xlu0 }
 0x1e0   :  { %972 = vst [vmem:[#allocation5 + $0x5a8] sm:$0xff] %v652_v20  ;;  %956 = vst [vmem:[#allocation5 + $0x528] sm:$0xff] %v620_v21 }
 0x1e3   :  { %764 = vxpose.xlu1.b32.cont [6/16] %v258_v22, 128  ;;  %v653_v24 = vpop.trf.xlu1  ;;  %732 = vxpose.xlu0.b32.cont [6/16] %v257_v23, 128  ;;  %v621_v25 = vpop.trf.xlu0 }
 0x1e4   :  { %973 = vst [vmem:[#allocation5 + $0x5b0] sm:$0xff] %v653_v24  ;;  %957 = vst [vmem:[#allocation5 + $0x530] sm:$0xff] %v621_v25 }
 0x1e7   :  { %765 = vxpose.xlu1.b32.cont [7/16] %v260_v26, 128  ;;  %v654_v28 = vpop.trf.xlu1  ;;  %733 = vxpose.xlu0.b32.cont [7/16] %v259_v27, 128  ;;  %v622_v29 = vpop.trf.xlu0 }
 0x1e8   :  { %974 = vst [vmem:[#allocation5 + $0x5b8] sm:$0xff] %v654_v28  ;;  %958 = vst [vmem:[#allocation5 + $0x538] sm:$0xff] %v622_v29 }
 0x1eb   :  { %766 = vxpose.xlu1.b32.cont [8/16] %v262_v30, 128  ;;  %v655_v32 = vpop.trf.xlu1  ;;  %734 = vxpose.xlu0.b32.cont [8/16] %v261_v31, 128  ;;  %v623_v33 = vpop.trf.xlu0 }
 0x1ec   :  { %975 = vst [vmem:[#allocation5 + $0x5c0] sm:$0xff] %v655_v32  ;;  %959 = vst [vmem:[#allocation5 + $0x540] sm:$0xff] %v623_v33 }
 0x1ef   :  { %767 = vxpose.xlu1.b32.cont [9/16] %v264_v34, 128  ;;  %v656_v36 = vpop.trf.xlu1  ;;  %735 = vxpose.xlu0.b32.cont [9/16] %v263_v35, 128  ;;  %v624_v37 = vpop.trf.xlu0 }
 0x1f0   :  { %976 = vst [vmem:[#allocation5 + $0x5c8] sm:$0xff] %v656_v36  ;;  %960 = vst [vmem:[#allocation5 + $0x548] sm:$0xff] %v624_v37 }
 0x1f3   :  { %768 = vxpose.xlu1.b32.cont [10/16] %v266_v38, 128  ;;  %v657_v40 = vpop.trf.xlu1  ;;  %736 = vxpose.xlu0.b32.cont [10/16] %v265_v39, 128  ;;  %v625_v41 = vpop.trf.xlu0 }
 0x1f4   :  { %977 = vst [vmem:[#allocation5 + $0x5d0] sm:$0xff] %v657_v40  ;;  %961 = vst [vmem:[#allocation5 + $0x550] sm:$0xff] %v625_v41 }
 0x1f7   :  { %769 = vxpose.xlu1.b32.cont [11/16] %v268_v42, 128  ;;  %v658_v44 = vpop.trf.xlu1  ;;  %737 = vxpose.xlu0.b32.cont [11/16] %v267_v43, 128  ;;  %v626_v45 = vpop.trf.xlu0 }
 0x1f8   :  { %978 = vst [vmem:[#allocation5 + $0x5d8] sm:$0xff] %v658_v44  ;;  %962 = vst [vmem:[#allocation5 + $0x558] sm:$0xff] %v626_v45 }
 0x1fb   :  { %770 = vxpose.xlu1.b32.cont [12/16] %v270_v46, 128  ;;  %v659_v48 = vpop.trf.xlu1  ;;  %738 = vxpose.xlu0.b32.cont [12/16] %v269_v47, 128  ;;  %v627_v49 = vpop.trf.xlu0 }
 0x1fc   :  { %979 = vst [vmem:[#allocation5 + $0x5e0] sm:$0xff] %v659_v48  ;;  %963 = vst [vmem:[#allocation5 + $0x560] sm:$0xff] %v627_v49 }
 0x1ff   :  { %771 = vxpose.xlu1.b32.cont [13/16] %v272_v50, 128  ;;  %v660_v52 = vpop.trf.xlu1  ;;  %739 = vxpose.xlu0.b32.cont [13/16] %v271_v51, 128  ;;  %v628_v53 = vpop.trf.xlu0 }
 0x200   :  { %980 = vst [vmem:[#allocation5 + $0x5e8] sm:$0xff] %v660_v52  ;;  %964 = vst [vmem:[#allocation5 + $0x568] sm:$0xff] %v628_v53 }
 0x203   :  { %772 = vxpose.xlu1.b32.cont [14/16] %v274_v54, 128  ;;  %v661_v56 = vpop.trf.xlu1  ;;  %740 = vxpose.xlu0.b32.cont [14/16] %v273_v55, 128  ;;  %v629_v57 = vpop.trf.xlu0 }
 0x204   :  { %981 = vst [vmem:[#allocation5 + $0x5f0] sm:$0xff] %v661_v56  ;;  %965 = vst [vmem:[#allocation5 + $0x570] sm:$0xff] %v629_v57 }
 0x207   :  { %773 = vxpose.xlu1.b32.cont [15/16] %v276_v58, 128  ;;  %v662_v60 = vpop.trf.xlu1  ;;  %741 = vxpose.xlu0.b32.cont [15/16] %v275_v59, 128  ;;  %v630_v61 = vpop.trf.xlu0 }
 0x208   :  { %982 = vst [vmem:[#allocation5 + $0x5f8] sm:$0xff] %v662_v60  ;;  %966 = vst [vmem:[#allocation5 + $0x578] sm:$0xff] %v630_v61 }
 0x20b   :  { %774 = vxpose.xlu1.b32.end [16/16] %v278_v62, 128  ;;  %v711_v0 = vpop.trf.xlu1  ;;  %742 = vxpose.xlu0.b32.end [16/16] %v277_v63, 128  ;;  %v679_v1 = vpop.trf.xlu0 }
 0x20c   :  { %999 = vst [vmem:[#allocation5 + $0x680] sm:$0xff] %v711_v0  ;;  %983 = vst [vmem:[#allocation5 + $0x600] sm:$0xff] %v679_v1 }
 0x20f   :  { %v712_v2 = vpop.trf.xlu1  ;;  %v680_v3 = vpop.trf.xlu0 }
 0x210   :  { %1000 = vst [vmem:[#allocation5 + $0x688] sm:$0xff] %v712_v2  ;;  %984 = vst [vmem:[#allocation5 + $0x608] sm:$0xff] %v680_v3 }
 0x213   :  { %v713_v4 = vpop.trf.xlu1  ;;  %v681_v5 = vpop.trf.xlu0 }
 0x214   :  { %1001 = vst [vmem:[#allocation5 + $0x690] sm:$0xff] %v713_v4  ;;  %985 = vst [vmem:[#allocation5 + $0x610] sm:$0xff] %v681_v5 }
 0x217   :  { %v714_v6 = vpop.trf.xlu1  ;;  %v682_v7 = vpop.trf.xlu0 }
 0x218   :  { %1002 = vst [vmem:[#allocation5 + $0x698] sm:$0xff] %v714_v6  ;;  %986 = vst [vmem:[#allocation5 + $0x618] sm:$0xff] %v682_v7 }
 0x21b   :  { %v715_v8 = vpop.trf.xlu1  ;;  %v683_v9 = vpop.trf.xlu0 }
 0x21c   :  { %1003 = vst [vmem:[#allocation5 + $0x6a0] sm:$0xff] %v715_v8  ;;  %987 = vst [vmem:[#allocation5 + $0x620] sm:$0xff] %v683_v9 }
 0x21f   :  { %v716_v10 = vpop.trf.xlu1  ;;  %v684_v11 = vpop.trf.xlu0 }
 0x220   :  { %1004 = vst [vmem:[#allocation5 + $0x6a8] sm:$0xff] %v716_v10  ;;  %988 = vst [vmem:[#allocation5 + $0x628] sm:$0xff] %v684_v11 }
 0x223   :  { %v717_v12 = vpop.trf.xlu1  ;;  %v685_v13 = vpop.trf.xlu0 }
 0x224   :  { %1005 = vst [vmem:[#allocation5 + $0x6b0] sm:$0xff] %v717_v12  ;;  %989 = vst [vmem:[#allocation5 + $0x630] sm:$0xff] %v685_v13 }
 0x227   :  { %v718_v14 = vpop.trf.xlu1  ;;  %v686_v15 = vpop.trf.xlu0 }
 0x228   :  { %1006 = vst [vmem:[#allocation5 + $0x6b8] sm:$0xff] %v718_v14  ;;  %990 = vst [vmem:[#allocation5 + $0x638] sm:$0xff] %v686_v15 }
 0x22b   :  { %v719_v16 = vpop.trf.xlu1  ;;  %v687_v17 = vpop.trf.xlu0 }
 0x22c   :  { %1007 = vst [vmem:[#allocation5 + $0x6c0] sm:$0xff] %v719_v16  ;;  %991 = vst [vmem:[#allocation5 + $0x640] sm:$0xff] %v687_v17 }
 0x22f   :  { %v720_v18 = vpop.trf.xlu1  ;;  %v688_v19 = vpop.trf.xlu0 }
 0x230   :  { %1008 = vst [vmem:[#allocation5 + $0x6c8] sm:$0xff] %v720_v18  ;;  %992 = vst [vmem:[#allocation5 + $0x648] sm:$0xff] %v688_v19 }
 0x233   :  { %v721_v20 = vpop.trf.xlu1  ;;  %v689_v21 = vpop.trf.xlu0 }
 0x234   :  { %1009 = vst [vmem:[#allocation5 + $0x6d0] sm:$0xff] %v721_v20  ;;  %993 = vst [vmem:[#allocation5 + $0x650] sm:$0xff] %v689_v21 }
 0x237   :  { %v722_v22 = vpop.trf.xlu1  ;;  %v690_v23 = vpop.trf.xlu0 }
 0x238   :  { %1010 = vst [vmem:[#allocation5 + $0x6d8] sm:$0xff] %v722_v22  ;;  %994 = vst [vmem:[#allocation5 + $0x658] sm:$0xff] %v690_v23 }
 0x23b   :  { %v723_v24 = vpop.trf.xlu1  ;;  %v691_v25 = vpop.trf.xlu0 }
 0x23c   :  { %1011 = vst [vmem:[#allocation5 + $0x6e0] sm:$0xff] %v723_v24  ;;  %995 = vst [vmem:[#allocation5 + $0x660] sm:$0xff] %v691_v25 }
 0x23f   :  { %v724_v26 = vpop.trf.xlu1  ;;  %v692_v27 = vpop.trf.xlu0 }
 0x240   :  { %1012 = vst [vmem:[#allocation5 + $0x6e8] sm:$0xff] %v724_v26  ;;  %996 = vst [vmem:[#allocation5 + $0x668] sm:$0xff] %v692_v27 }
 0x243   :  { %v725_v28 = vpop.trf.xlu1  ;;  %v693_v29 = vpop.trf.xlu0 }
 0x244   :  { %1013 = vst [vmem:[#allocation5 + $0x6f0] sm:$0xff] %v725_v28  ;;  %997 = vst [vmem:[#allocation5 + $0x670] sm:$0xff] %v693_v29 }
 0x247   :  { %v726_v30 = vpop.trf.xlu1  ;;  %v694_v31 = vpop.trf.xlu0 }
 0x248   :  { %1014 = vst [vmem:[#allocation5 + $0x6f8] sm:$0xff] %v726_v30  ;;  %998 = vst [vmem:[#allocation5 + $0x678] sm:$0xff] %v694_v31 }
 0x24b   :  { %v775_v32 = vpop.trf.xlu1  ;;  %v743_v33 = vpop.trf.xlu0 }
 0x24c   :  { %1031 = vst [vmem:[#allocation5 + $0x780] sm:$0xff] %v775_v32  ;;  %1015 = vst [vmem:[#allocation5 + $0x700] sm:$0xff] %v743_v33 }
 0x24f   :  { %v776_v34 = vpop.trf.xlu1  ;;  %v744_v35 = vpop.trf.xlu0 }
 0x250   :  { %1032 = vst [vmem:[#allocation5 + $0x788] sm:$0xff] %v776_v34  ;;  %1016 = vst [vmem:[#allocation5 + $0x708] sm:$0xff] %v744_v35 }
 0x253   :  { %v777_v36 = vpop.trf.xlu1  ;;  %v745_v37 = vpop.trf.xlu0 }
 0x254   :  { %1033 = vst [vmem:[#allocation5 + $0x790] sm:$0xff] %v777_v36  ;;  %1017 = vst [vmem:[#allocation5 + $0x710] sm:$0xff] %v745_v37 }
 0x257   :  { %v778_v38 = vpop.trf.xlu1  ;;  %v746_v39 = vpop.trf.xlu0 }
 0x258   :  { %1034 = vst [vmem:[#allocation5 + $0x798] sm:$0xff] %v778_v38  ;;  %1018 = vst [vmem:[#allocation5 + $0x718] sm:$0xff] %v746_v39 }
 0x25b   :  { %v779_v40 = vpop.trf.xlu1  ;;  %v747_v41 = vpop.trf.xlu0 }
 0x25c   :  { %1035 = vst [vmem:[#allocation5 + $0x7a0] sm:$0xff] %v779_v40  ;;  %1019 = vst [vmem:[#allocation5 + $0x720] sm:$0xff] %v747_v41 }
 0x25f   :  { %v780_v42 = vpop.trf.xlu1  ;;  %v748_v43 = vpop.trf.xlu0 }
 0x260   :  { %1036 = vst [vmem:[#allocation5 + $0x7a8] sm:$0xff] %v780_v42  ;;  %1020 = vst [vmem:[#allocation5 + $0x728] sm:$0xff] %v748_v43 }
 0x263   :  { %v781_v44 = vpop.trf.xlu1  ;;  %v749_v45 = vpop.trf.xlu0 }
 0x264   :  { %1037 = vst [vmem:[#allocation5 + $0x7b0] sm:$0xff] %v781_v44  ;;  %1021 = vst [vmem:[#allocation5 + $0x730] sm:$0xff] %v749_v45 }
 0x267   :  { %v782_v46 = vpop.trf.xlu1  ;;  %v750_v47 = vpop.trf.xlu0 }
 0x268   :  { %1038 = vst [vmem:[#allocation5 + $0x7b8] sm:$0xff] %v782_v46  ;;  %1022 = vst [vmem:[#allocation5 + $0x738] sm:$0xff] %v750_v47 }
 0x26b   :  { %v783_v48 = vpop.trf.xlu1  ;;  %v751_v49 = vpop.trf.xlu0 }
 0x26c   :  { %1039 = vst [vmem:[#allocation5 + $0x7c0] sm:$0xff] %v783_v48  ;;  %1023 = vst [vmem:[#allocation5 + $0x740] sm:$0xff] %v751_v49 }
 0x26f   :  { %v784_v50 = vpop.trf.xlu1  ;;  %v752_v51 = vpop.trf.xlu0 }
 0x270   :  { %1040 = vst [vmem:[#allocation5 + $0x7c8] sm:$0xff] %v784_v50  ;;  %1024 = vst [vmem:[#allocation5 + $0x748] sm:$0xff] %v752_v51 }
 0x273   :  { %v785_v52 = vpop.trf.xlu1  ;;  %v753_v53 = vpop.trf.xlu0 }
 0x274   :  { %1041 = vst [vmem:[#allocation5 + $0x7d0] sm:$0xff] %v785_v52  ;;  %1025 = vst [vmem:[#allocation5 + $0x750] sm:$0xff] %v753_v53 }
 0x277   :  { %v786_v54 = vpop.trf.xlu1  ;;  %v754_v55 = vpop.trf.xlu0 }
 0x278   :  { %1042 = vst [vmem:[#allocation5 + $0x7d8] sm:$0xff] %v786_v54  ;;  %1026 = vst [vmem:[#allocation5 + $0x758] sm:$0xff] %v754_v55 }
 0x27b   :  { %v787_v56 = vpop.trf.xlu1  ;;  %v755_v57 = vpop.trf.xlu0 }
 0x27c   :  { %1043 = vst [vmem:[#allocation5 + $0x7e0] sm:$0xff] %v787_v56  ;;  %1027 = vst [vmem:[#allocation5 + $0x760] sm:$0xff] %v755_v57 }
 0x27f   :  { %v788_v58 = vpop.trf.xlu1  ;;  %v756_v59 = vpop.trf.xlu0 }
 0x280   :  { %1044 = vst [vmem:[#allocation5 + $0x7e8] sm:$0xff] %v788_v58  ;;  %1028 = vst [vmem:[#allocation5 + $0x768] sm:$0xff] %v756_v59 }
 0x283   :  { %v789_v60 = vpop.trf.xlu1  ;;  %v757_v61 = vpop.trf.xlu0 }
 0x284   :  { %1045 = vst [vmem:[#allocation5 + $0x7f0] sm:$0xff] %v789_v60  ;;  %1029 = vst [vmem:[#allocation5 + $0x770] sm:$0xff] %v757_v61 }
 0x287   :  { %v790_v62 = vpop.trf.xlu1  ;;  %v758_v63 = vpop.trf.xlu0 }
 0x288   :  { %1046 = vst [vmem:[#allocation5 + $0x7f8] sm:$0xff] %v790_v62  ;;  %1030 = vst [vmem:[#allocation5 + $0x778] sm:$0xff] %v758_v63 }
 0x289   :  { %1101 = shalt.err (!%p1098_p9)
}
 0x28a   :  { %s1118_s15 = smov 128   ;;  %s1119_s16 = smov 8  }
 0x28b   :  { %1058 = dma.vmem_to_hbm [thread:$0]  %s1053_s13, 32768, %s1137_s1, [#allocation4], %s1118_s15, %s1118_s15, %s1119_s16  }
 0x28c   :  { %1112 = dma.done.wait [#allocation4], 32768  }
 0x28d   :  { %1113 = vsyncadd [#allocation4], 4294934528 }
 0x28e   :  { %1062 = vsyncpa [#allocation3], 1 }
 0x28f   :  { %1063 = vsyncpa [#allocation4], 1 }

</bundles_post_ra>
